<compile_context>
chip_gen: v7x
topology: tpu7x:2x2x1
jax: 0.10.0
libtpu: 0.0.40
codegen_flags: <defaults>
</compile_context>

<pallas_src>
import functools

import jax
import jax.numpy as jnp
import numpy as np
from jax import lax
from jax.experimental import pallas as pl
from jax.experimental.pallas import tpu as pltpu

EPS = 1e-5


# ----------------------------------------------------------------------------
# In-kernel helpers (traced inline into the fused kernel).
# ----------------------------------------------------------------------------
def _dot2(x3, w2):
    """(N, R, K) value x (K, L) value -> (N*R, L) f32 via one MXU matmul.

    The reshape is layout-free because R is a multiple of 8 here."""
    n, r, k = x3.shape
    return jnp.dot(x3.reshape(n * r, k), w2, preferred_element_type=jnp.float32)


def _bn_scale_shift(s1, s2, count, csum, gamma_t, beta_t):
    """Training-mode BatchNorm scale/shift in the packed (W*C) lane layout.

    s1 / s2 : (1, W*C) per-lane sum / sum-of-squares over all rows.
    csum    : (W*C, W*C) 0/1 matrix that sums the W groups of each channel and
              re-broadcasts the per-channel total to every group (one matmul
              replaces a strided cross-lane reduction + tile).
    gamma_t / beta_t : (1, W*C) BN affine params pre-tiled over the W groups.
    """
    inv = 1.0 / count
    mean = jnp.dot(s1, csum, preferred_element_type=jnp.float32) * inv
    ex2 = jnp.dot(s2, csum, preferred_element_type=jnp.float32) * inv
    var = ex2 - mean * mean
    scale = gamma_t * lax.rsqrt(var + EPS)
    shift = beta_t - mean * scale
    return scale, shift


def _conv3x3_band(rp_ref, x2, b_ref, n, r):
    """3x3 / stride-1 / pad-1 conv as 3 banded matmuls in the packed layout.

    rp_ref : (n, r+2, L) bf16 scratch whose halo rows are already zero.
    x2     : (n*r, L) bf16 value (unpadded rows of the conv input).
    b_ref  : (3, L, L_out) bf16 banded weights (kw taps + zero column padding
             folded into the matmul K dimension).
    """
    l_in = x2.shape[1]
    rp_ref[:, 1:r + 1, :] = x2.reshape(n, r, l_in)
    return (_dot2(rp_ref[:, 0:r, :], b_ref[0])
            + _dot2(rp_ref[:, 1:r + 1, :], b_ref[1])
            + _dot2(rp_ref[:, 2:r + 2, :], b_ref[2]))


def _res_block(x2, rp_ref, ba_ref, ga_ref, bea_ref, bb_ref, gb_ref, beb_ref,
               csum, n, r, count):
    """conv-bn-relu-conv-bn(+identity)-relu on packed (n*r, PW*C) f32 rows."""
    c1 = _conv3x3_band(rp_ref, x2.astype(jnp.bfloat16), ba_ref, n, r)
    sc1, sh1 = _bn_scale_shift(jnp.sum(c1, axis=0, keepdims=True),
                               jnp.sum(c1 * c1, axis=0, keepdims=True),
                               count, csum, ga_ref[...], bea_ref[...])
    a = jnp.maximum(c1 * sc1 + sh1, 0.0)
    c2 = _conv3x3_band(rp_ref, a.astype(jnp.bfloat16), bb_ref, n, r)
    sc2, sh2 = _bn_scale_shift(jnp.sum(c2, axis=0, keepdims=True),
                               jnp.sum(c2 * c2, axis=0, keepdims=True),
                               count, csum, gb_ref[...], beb_ref[...])
    # Identity handed over as a live value (no re-extraction from scratch).
    return jnp.maximum(c2 * sc2 + sh2 + x2, 0.0)


# ----------------------------------------------------------------------------
# Fused ConvSequence kernel.
# ----------------------------------------------------------------------------
def _conv_sequence_kernel(
    e0_ref, o0_ref,
    b0_ref, g0_ref, be0_ref, csum0_ref,
    sel_ref, csum1_ref,
    b1a_ref, g1a_ref, be1a_ref, b1b_ref, g1b_ref, be1b_ref,
    b2a_ref, g2a_ref, be2a_ref, b2b_ref, g2b_ref, be2b_ref,
    o_ref,
    aop_ref, rp_ref,
    *, channels,
):
    n = e0_ref.shape[0]
    ph = e0_ref.shape[1] - 1          # pooled height = H // 2
    wc = b0_ref.shape[2]              # stem lanes   = W      * C
    pwc = sel_ref.shape[2]            # pooled lanes = (W//2) * C
    w = wc // channels

    # Zero ONLY the halo rows of the scratch buffers (interiors are always
    # written before they are read).
    aop_ref[:, 0:1, :] = jnp.zeros((n, 1, wc), jnp.float32)
    rp_ref[:, 0:1, :] = jnp.zeros((n, 1, pwc), jnp.bfloat16)
    rp_ref[:, ph + 1:ph + 2, :] = jnp.zeros((n, 1, pwc), jnp.bfloat16)

    # --- stem conv3x3: even / odd output rows as two banded-matmul streams ---
    # e0_ref holds padded rows 0,2,...,H   (a zero row, then the odd input rows)
    # o0_ref holds padded rows 1,3,...,H+1 (the even input rows, then a zero row)
    ce = (_dot2(e0_ref[:, 0:ph, :], b0_ref[0])
          + _dot2(o0_ref[:, 0:ph, :], b0_ref[1])
          + _dot2(e0_ref[:, 1:ph + 1, :], b0_ref[2]))     # conv rows 0,2,...
    co = (_dot2(o0_ref[:, 0:ph, :], b0_ref[0])
          + _dot2(e0_ref[:, 1:ph + 1, :], b0_ref[1])
          + _dot2(o0_ref[:, 1:ph + 1, :], b0_ref[2]))     # conv rows 1,3,...

    # --- stem BN (batch statistics over both row streams) + ReLU -------------
    cnt0 = n * (2 * ph) * w
    sc0, sh0 = _bn_scale_shift(
        jnp.sum(ce, axis=0, keepdims=True) + jnp.sum(co, axis=0, keepdims=True),
        jnp.sum(ce * ce, axis=0, keepdims=True) + jnp.sum(co * co, axis=0, keepdims=True),
        cnt0, csum0_ref[...], g0_ref[...], be0_ref[...])
    ae = jnp.maximum(ce * sc0 + sh0, 0.0).reshape(n, ph, wc)   # even conv rows
    ao = jnp.maximum(co * sc0 + sh0, 0.0).reshape(n, ph, wc)   # odd  conv rows

    # --- MaxPool2d(kernel=3, stride=2, padding=1) -----------------------------
    # Vertical: pooled row i = max(conv rows 2i-1, 2i, 2i+1).  The zero padding
    # stands in for -inf because the activations are post-ReLU (>= 0).
    aop_ref[:, 1:ph + 1, :] = ao
    v = jnp.maximum(jnp.maximum(ae, ao), aop_ref[:, 0:ph, :]).reshape(n * ph, wc)
    # Horizontal 3-tap max + stride-2 column subsample: three 0/1 selection
    # matmuls (one per tap) -> one dense pooled tensor, no per-column stores.
    pooled = jnp.maximum(
        jnp.maximum(jnp.dot(v, sel_ref[0], preferred_element_type=jnp.float32),
                    jnp.dot(v, sel_ref[1], preferred_element_type=jnp.float32)),
        jnp.dot(v, sel_ref[2], preferred_element_type=jnp.float32))   # (N*PH, PW*C)

    # --- residual blocks ------------------------------------------------------
    cnt1 = n * ph * (pwc // channels)
    r1 = _res_block(pooled, rp_ref, b1a_ref, g1a_ref, be1a_ref,
                    b1b_ref, g1b_ref, be1b_ref, csum1_ref[...], n, ph, cnt1)
    r2 = _res_block(r1, rp_ref, b2a_ref, g2a_ref, be2a_ref,
                    b2b_ref, g2b_ref, be2b_ref, csum1_ref[...], n, ph, cnt1)

    o_ref[...] = r2.reshape(n, ph, pwc)


# ----------------------------------------------------------------------------
# Wrapper-side constant builders (run in XLA / at trace time, outside kernel).
# ----------------------------------------------------------------------------
def _band_weights(w, width):
    """(3, 3, Cin, Cout) conv weights -> (3, width*Cin, width*Cout) banded mats.

    B[kh][(j+kw-1)*Cin + ci, j*Cout + co] = w[kh, kw, ci, co]; taps falling
    outside [0, width) are simply absent (== zero column padding)."""
    mats = []
    for kh in range(3):
        b = 0.0
        for kw in range(3):
            b = b + jnp.kron(jnp.eye(width, k=1 - kw, dtype=w.dtype), w[kh, kw])
        mats.append(b)
    return jnp.stack(mats)


def _pool_select_mats(width, c):
    """(3, width*c, (width//2)*c) 0/1 matrices selecting columns 2j-1, 2j, 2j+1."""
    pw = width // 2
    mats = []
    for t in range(3):
        e = np.zeros((width, pw), np.float32)
        for j in range(pw):
            r = 2 * j - 1 + t
            if 0 <= r < width:
                e[r, j] = 1.0
        mats.append(np.kron(e, np.eye(c, dtype=np.float32)))
    return jnp.asarray(np.stack(mats))


def _channel_sum_mat(width, c):
    """(width*c, width*c) 0/1 matrix: per-channel sum over the width groups."""
    return jnp.asarray(np.kron(np.ones((width, width), np.float32),
                               np.eye(c, dtype=np.float32)))


def _tile_lanes(v, width):
    """(C,) per-channel vector -> (1, width*C), tiled over the packed lane dim."""
    return jnp.tile(v.reshape(1, -1), (1, width))


# ----------------------------------------------------------------------------
# Wrapper: single fused pallas_call.
# ----------------------------------------------------------------------------
@jax.jit
def conv_sequence(x_nchw, params):
    n, cin, h, wdt = x_nchw.shape
    c = params["conv"]["w"].shape[-1]
    assert h % 2 == 0 and wdt % 2 == 0, "max-pool path assumes even spatial dims"
    ph, pw = h // 2, wdt // 2
    bf = jnp.bfloat16

    # NCHW -> lane-packed rows (N, H, W*Cin); split by row parity and add the
    # zero halo rows here (tiny XLA ops) so the kernel does no input copies.
    packed = jnp.transpose(x_nchw, (0, 2, 3, 1)).reshape(n, h, wdt * cin)
    zrow = jnp.zeros((n, 1, wdt * cin), packed.dtype)
    # rows 0,2,...,H of the zero-padded input  (= zero row, then odd input rows)
    e0 = jnp.concatenate([zrow, packed[:, 1::2, :]], axis=1).astype(bf)
    # rows 1,3,...,H+1 of the zero-padded input (= even input rows, then zero row)
    o0 = jnp.concatenate([packed[:, 0::2, :], zrow], axis=1).astype(bf)

    p0, p1, p2 = params["conv"], params["res1"], params["res2"]
    # Conv biases are intentionally not passed: training-mode BN cancels them.
    args = (
        e0, o0,
        _band_weights(p0["w"], wdt).astype(bf),
        _tile_lanes(p0["g"], wdt), _tile_lanes(p0["be"], wdt),
        _channel_sum_mat(wdt, c),
        _pool_select_mats(wdt, c),
        _channel_sum_mat(pw, c),
        _band_weights(p1["w1"], pw).astype(bf),
        _tile_lanes(p1["g1"], pw), _tile_lanes(p1["be1"], pw),
        _band_weights(p1["w2"], pw).astype(bf),
        _tile_lanes(p1["g2"], pw), _tile_lanes(p1["be2"], pw),
        _band_weights(p2["w1"], pw).astype(bf),
        _tile_lanes(p2["g1"], pw), _tile_lanes(p2["be1"], pw),
        _band_weights(p2["w2"], pw).astype(bf),
        _tile_lanes(p2["g2"], pw), _tile_lanes(p2["be2"], pw),
    )

    kern = functools.partial(_conv_sequence_kernel, channels=c)
    out_packed = pl.pallas_call(
        kern,
        out_shape=jax.ShapeDtypeStruct((n, ph, pw * c), jnp.float32),
        scratch_shapes=[
            pltpu.VMEM((n, ph + 1, wdt * c), jnp.float32),   # pool row-shift buffer
            pltpu.VMEM((n, ph + 2, pw * c), jnp.bfloat16),   # padded res-conv input
        ],
    )(*args)
    # packed (N, PH, PW*C) -> NCHW
    return jnp.transpose(out_packed.reshape(n, ph, pw, c), (0, 3, 1, 2))


# ----------------------------------------------------------------------------
# Deterministic parameter init (shapes from ConvSequence.__init__)
# ----------------------------------------------------------------------------
def init_params(key, cin, cout):
    ks = iter(jax.random.split(key, 32))

    def conv_p(ci, co):
        return (0.1 * jax.random.normal(next(ks), (3, 3, ci, co), jnp.float32),
                0.1 * jax.random.normal(next(ks), (co,), jnp.float32))

    def bn_p(c):
        return (1.0 + 0.1 * jax.random.normal(next(ks), (c,), jnp.float32),
                0.1 * jax.random.normal(next(ks), (c,), jnp.float32))

    def res_p(c):
        w1, b1 = conv_p(c, c); g1, be1 = bn_p(c)
        w2, b2 = conv_p(c, c); g2, be2 = bn_p(c)
        return dict(w1=w1, b1=b1, g1=g1, be1=be1,
                    w2=w2, b2=b2, g2=g2, be2=be2)

    w, b = conv_p(cin, cout)
    g, be = bn_p(cout)
    return dict(conv=dict(w=w, b=b, g=g, be=be),
                res1=res_p(cout), res2=res_p(cout))


# ----------------------------------------------------------------------------
# Pure-JAX reference (keeps the conv bias, proving it is a no-op under BN)
# ----------------------------------------------------------------------------
def _ref_conv(x, w, b):
    y = lax.conv_general_dilated(x, w, (1, 1), ((1, 1), (1, 1)),
                                 dimension_numbers=("NHWC", "HWIO", "NHWC"))
    return y + b


def _ref_bn_relu(y, g, b, residual=None):
    mean = jnp.mean(y, axis=(0, 1, 2), keepdims=True)
    var = jnp.mean((y - mean) ** 2, axis=(0, 1, 2), keepdims=True)
    out = (y - mean) * lax.rsqrt(var + EPS) * g + b
    if residual is not None:
        out = out + residual
    return jnp.maximum(out, 0.0)


def _ref_maxpool(x):
    return lax.reduce_window(x, -jnp.inf, lax.max, (1, 3, 3, 1), (1, 2, 2, 1),
                             padding=((0, 0), (1, 1), (1, 1), (0, 0)))


def _ref_resblock(x, p):
    out = _ref_conv(x, p["w1"], p["b1"])
    out = _ref_bn_relu(out, p["g1"], p["be1"])
    out = _ref_conv(out, p["w2"], p["b2"])
    return _ref_bn_relu(out, p["g2"], p["be2"], residual=x)


def _ref_conv_sequence(x_nchw, params):
    x = jnp.transpose(x_nchw, (0, 2, 3, 1))
    out = _ref_conv(x, params["conv"]["w"], params["conv"]["b"])
    out = _ref_bn_relu(out, params["conv"]["g"], params["conv"]["be"])
    out = _ref_maxpool(out)
    out = _ref_resblock(out, params["res1"])
    out = _ref_resblock(out, params["res2"])
    return jnp.transpose(out, (0, 3, 1, 2))


if __name__ == "__main__":
    key = jax.random.PRNGKey(0)
    k_x, k_p = jax.random.split(key)

    N, Cin, Hin, Win = 2, 4, 16, 16
    Cout = 8

    x = jax.random.normal(k_x, (N, Cin, Hin, Win), jnp.float32)   # NCHW input
    params = init_params(k_p, Cin, Cout)

    out = jax.block_until_ready(conv_sequence(x, params))
    assert out.shape == (N, Cout, Hin // 2, Win // 2), out.shape

    ref = jax.block_until_ready(_ref_conv_sequence(x, params))
    np.testing.assert_allclose(np.asarray(out), np.asarray(ref),
                               rtol=3e-2, atol=3e-2)

    print("KERNEL_OK")
</pallas_src>

<mosaic_0001>
module attributes {stable_mosaic.version = 11 : i64} {
  func.func @_conv_sequence_kernel(%arg0: memref<2x9x64xbf16, #tpu.memory_space<vmem>>, %arg1: memref<2x9x64xbf16, #tpu.memory_space<vmem>>, %arg2: memref<3x64x128xbf16, #tpu.memory_space<vmem>>, %arg3: memref<1x128xf32, #tpu.memory_space<vmem>>, %arg4: memref<1x128xf32, #tpu.memory_space<vmem>>, %arg5: memref<128x128xf32, #tpu.memory_space<vmem>>, %arg6: memref<3x128x64xf32, #tpu.memory_space<vmem>>, %arg7: memref<64x64xf32, #tpu.memory_space<vmem>>, %arg8: memref<3x64x64xbf16, #tpu.memory_space<vmem>>, %arg9: memref<1x64xf32, #tpu.memory_space<vmem>>, %arg10: memref<1x64xf32, #tpu.memory_space<vmem>>, %arg11: memref<3x64x64xbf16, #tpu.memory_space<vmem>>, %arg12: memref<1x64xf32, #tpu.memory_space<vmem>>, %arg13: memref<1x64xf32, #tpu.memory_space<vmem>>, %arg14: memref<3x64x64xbf16, #tpu.memory_space<vmem>>, %arg15: memref<1x64xf32, #tpu.memory_space<vmem>>, %arg16: memref<1x64xf32, #tpu.memory_space<vmem>>, %arg17: memref<3x64x64xbf16, #tpu.memory_space<vmem>>, %arg18: memref<1x64xf32, #tpu.memory_space<vmem>>, %arg19: memref<1x64xf32, #tpu.memory_space<vmem>>, %arg20: memref<2x8x64xf32, #tpu.memory_space<vmem>>, %arg21: memref<2x9x128xf32, #tpu.memory_space<vmem>>, %arg22: memref<2x10x64xbf16, #tpu.memory_space<vmem>>) attributes {dimension_semantics = [], scalar_prefetch = 0 : i64, scratch_operands = 2 : i64, tpu.core_type = #tpu.core_type<tc>} {
    %cst = arith.constant 0.000000e+00 : f32
    %0 = vector.broadcast %cst : f32 to vector<2x1x128xf32>
    %c0 = arith.constant 0 : index
    %c0_0 = arith.constant 0 : index
    %c0_1 = arith.constant 0 : index
    %1 = vector.load %arg21[%c0, %c0_0, %c0_1] : memref<2x9x128xf32, #tpu.memory_space<vmem>>, vector<2x1x128xf32>
    tpu.vector_store %arg21[%c0, %c0_0, %c0_1], %0 {strides = array<i32>} : memref<2x9x128xf32, #tpu.memory_space<vmem>>, vector<2x1x128xf32>,
    %cst_2 = arith.constant 0.000000e+00 : bf16
    %2 = vector.broadcast %cst_2 : bf16 to vector<2x1x64xbf16>
    %c0_3 = arith.constant 0 : index
    %c0_4 = arith.constant 0 : index
    %c0_5 = arith.constant 0 : index
    %3 = vector.load %arg22[%c0_3, %c0_4, %c0_5] : memref<2x10x64xbf16, #tpu.memory_space<vmem>>, vector<2x1x64xbf16>
    tpu.vector_store %arg22[%c0_3, %c0_4, %c0_5], %2 {strides = array<i32>} : memref<2x10x64xbf16, #tpu.memory_space<vmem>>, vector<2x1x64xbf16>,
    %cst_6 = arith.constant 0.000000e+00 : bf16
    %4 = vector.broadcast %cst_6 : bf16 to vector<2x1x64xbf16>
    %c0_7 = arith.constant 0 : index
    %c9 = arith.constant 9 : index
    %c0_8 = arith.constant 0 : index
    %5 = vector.load %arg22[%c0_7, %c9, %c0_8] : memref<2x10x64xbf16, #tpu.memory_space<vmem>>, vector<2x1x64xbf16>
    tpu.vector_store %arg22[%c0_7, %c9, %c0_8], %4 {strides = array<i32>} : memref<2x10x64xbf16, #tpu.memory_space<vmem>>, vector<2x1x64xbf16>,
    %c0_9 = arith.constant 0 : index
    %c0_10 = arith.constant 0 : index
    %c0_11 = arith.constant 0 : index
    %6 = vector.load %arg0[%c0_9, %c0_10, %c0_11] : memref<2x9x64xbf16, #tpu.memory_space<vmem>>, vector<2x8x64xbf16>
    %c0_12 = arith.constant 0 : index
    %c0_13 = arith.constant 0 : index
    %c0_14 = arith.constant 0 : index
    %7 = vector.load %arg2[%c0_12, %c0_13, %c0_14] : memref<3x64x128xbf16, #tpu.memory_space<vmem>>, vector<1x64x128xbf16>
    %8 = vector.shape_cast %7 : vector<1x64x128xbf16> to vector<64x128xbf16>
    %9 = vector.shape_cast %6 : vector<2x8x64xbf16> to vector<16x64xbf16>
    %cst_15 = arith.constant dense<0.000000e+00> : vector<16x128xf32>
    %10 = tpu.matmul %9, %8, %cst_15 {dimension_numbers = #tpu.dot_dimension_numbers<[1], [0], [0], [1], [0, 0, 1, 1], [], []>} : vector<16x64xbf16>, vector<64x128xbf16>, vector<16x128xf32> -> vector<16x128xf32>
    %c0_16 = arith.constant 0 : index
    %c0_17 = arith.constant 0 : index
    %c0_18 = arith.constant 0 : index
    %11 = vector.load %arg1[%c0_16, %c0_17, %c0_18] : memref<2x9x64xbf16, #tpu.memory_space<vmem>>, vector<2x8x64xbf16>
    %c1 = arith.constant 1 : index
    %c0_19 = arith.constant 0 : index
    %c0_20 = arith.constant 0 : index
    %12 = vector.load %arg2[%c1, %c0_19, %c0_20] : memref<3x64x128xbf16, #tpu.memory_space<vmem>>, vector<1x64x128xbf16>
    %13 = vector.shape_cast %12 : vector<1x64x128xbf16> to vector<64x128xbf16>
    %14 = vector.shape_cast %11 : vector<2x8x64xbf16> to vector<16x64xbf16>
    %cst_21 = arith.constant dense<0.000000e+00> : vector<16x128xf32>
    %15 = tpu.matmul %14, %13, %cst_21 {dimension_numbers = #tpu.dot_dimension_numbers<[1], [0], [0], [1], [0, 0, 1, 1], [], []>} : vector<16x64xbf16>, vector<64x128xbf16>, vector<16x128xf32> -> vector<16x128xf32>
    %16 = arith.addf %10, %15 : vector<16x128xf32>
    %c0_22 = arith.constant 0 : index
    %c1_23 = arith.constant 1 : index
    %c0_24 = arith.constant 0 : index
    %17 = vector.load %arg0[%c0_22, %c1_23, %c0_24] : memref<2x9x64xbf16, #tpu.memory_space<vmem>>, vector<2x8x64xbf16>
    %c2 = arith.constant 2 : index
    %c0_25 = arith.constant 0 : index
    %c0_26 = arith.constant 0 : index
    %18 = vector.load %arg2[%c2, %c0_25, %c0_26] : memref<3x64x128xbf16, #tpu.memory_space<vmem>>, vector<1x64x128xbf16>
    %19 = vector.shape_cast %18 : vector<1x64x128xbf16> to vector<64x128xbf16>
    %20 = vector.shape_cast %17 : vector<2x8x64xbf16> to vector<16x64xbf16>
    %cst_27 = arith.constant dense<0.000000e+00> : vector<16x128xf32>
    %21 = tpu.matmul %20, %19, %cst_27 {dimension_numbers = #tpu.dot_dimension_numbers<[1], [0], [0], [1], [0, 0, 1, 1], [], []>} : vector<16x64xbf16>, vector<64x128xbf16>, vector<16x128xf32> -> vector<16x128xf32>
    %22 = arith.addf %16, %21 : vector<16x128xf32>
    %c0_28 = arith.constant 0 : index
    %c0_29 = arith.constant 0 : index
    %c0_30 = arith.constant 0 : index
    %23 = vector.load %arg1[%c0_28, %c0_29, %c0_30] : memref<2x9x64xbf16, #tpu.memory_space<vmem>>, vector<2x8x64xbf16>
    %c0_31 = arith.constant 0 : index
    %c0_32 = arith.constant 0 : index
    %c0_33 = arith.constant 0 : index
    %24 = vector.load %arg2[%c0_31, %c0_32, %c0_33] : memref<3x64x128xbf16, #tpu.memory_space<vmem>>, vector<1x64x128xbf16>
    %25 = vector.shape_cast %24 : vector<1x64x128xbf16> to vector<64x128xbf16>
    %26 = vector.shape_cast %23 : vector<2x8x64xbf16> to vector<16x64xbf16>
    %cst_34 = arith.constant dense<0.000000e+00> : vector<16x128xf32>
    %27 = tpu.matmul %26, %25, %cst_34 {dimension_numbers = #tpu.dot_dimension_numbers<[1], [0], [0], [1], [0, 0, 1, 1], [], []>} : vector<16x64xbf16>, vector<64x128xbf16>, vector<16x128xf32> -> vector<16x128xf32>
    %c0_35 = arith.constant 0 : index
    %c1_36 = arith.constant 1 : index
    %c0_37 = arith.constant 0 : index
    %28 = vector.load %arg0[%c0_35, %c1_36, %c0_37] : memref<2x9x64xbf16, #tpu.memory_space<vmem>>, vector<2x8x64xbf16>
    %c1_38 = arith.constant 1 : index
    %c0_39 = arith.constant 0 : index
    %c0_40 = arith.constant 0 : index
    %29 = vector.load %arg2[%c1_38, %c0_39, %c0_40] : memref<3x64x128xbf16, #tpu.memory_space<vmem>>, vector<1x64x128xbf16>
    %30 = vector.shape_cast %29 : vector<1x64x128xbf16> to vector<64x128xbf16>
    %31 = vector.shape_cast %28 : vector<2x8x64xbf16> to vector<16x64xbf16>
    %cst_41 = arith.constant dense<0.000000e+00> : vector<16x128xf32>
    %32 = tpu.matmul %31, %30, %cst_41 {dimension_numbers = #tpu.dot_dimension_numbers<[1], [0], [0], [1], [0, 0, 1, 1], [], []>} : vector<16x64xbf16>, vector<64x128xbf16>, vector<16x128xf32> -> vector<16x128xf32>
    %33 = arith.addf %27, %32 : vector<16x128xf32>
    %c0_42 = arith.constant 0 : index
    %c1_43 = arith.constant 1 : index
    %c0_44 = arith.constant 0 : index
    %34 = vector.load %arg1[%c0_42, %c1_43, %c0_44] : memref<2x9x64xbf16, #tpu.memory_space<vmem>>, vector<2x8x64xbf16>
    %c2_45 = arith.constant 2 : index
    %c0_46 = arith.constant 0 : index
    %c0_47 = arith.constant 0 : index
    %35 = vector.load %arg2[%c2_45, %c0_46, %c0_47] : memref<3x64x128xbf16, #tpu.memory_space<vmem>>, vector<1x64x128xbf16>
    %36 = vector.shape_cast %35 : vector<1x64x128xbf16> to vector<64x128xbf16>
    %37 = vector.shape_cast %34 : vector<2x8x64xbf16> to vector<16x64xbf16>
    %cst_48 = arith.constant dense<0.000000e+00> : vector<16x128xf32>
    %38 = tpu.matmul %37, %36, %cst_48 {dimension_numbers = #tpu.dot_dimension_numbers<[1], [0], [0], [1], [0, 0, 1, 1], [], []>} : vector<16x64xbf16>, vector<64x128xbf16>, vector<16x128xf32> -> vector<16x128xf32>
    %39 = arith.addf %33, %38 : vector<16x128xf32>
    %cst_49 = arith.constant dense<0.000000e+00> : vector<128xf32>
    %40 = vector.multi_reduction <add>, %22, %cst_49 [0] : vector<16x128xf32> to vector<128xf32>
    %41 = vector.shape_cast %40 : vector<128xf32> to vector<1x128xf32>
    %cst_50 = arith.constant dense<0.000000e+00> : vector<128xf32>
    %42 = vector.multi_reduction <add>, %39, %cst_50 [0] : vector<16x128xf32> to vector<128xf32>
    %43 = vector.shape_cast %42 : vector<128xf32> to vector<1x128xf32>
    %44 = arith.addf %41, %43 : vector<1x128xf32>
    %45 = arith.mulf %22, %22 : vector<16x128xf32>
    %cst_51 = arith.constant dense<0.000000e+00> : vector<128xf32>
    %46 = vector.multi_reduction <add>, %45, %cst_51 [0] : vector<16x128xf32> to vector<128xf32>
    %47 = vector.shape_cast %46 : vector<128xf32> to vector<1x128xf32>
    %48 = arith.mulf %39, %39 : vector<16x128xf32>
    %cst_52 = arith.constant dense<0.000000e+00> : vector<128xf32>
    %49 = vector.multi_reduction <add>, %48, %cst_52 [0] : vector<16x128xf32> to vector<128xf32>
    %50 = vector.shape_cast %49 : vector<128xf32> to vector<1x128xf32>
    %51 = arith.addf %47, %50 : vector<1x128xf32>
    %c0_53 = arith.constant 0 : index
    %c0_54 = arith.constant 0 : index
    %52 = vector.load %arg5[%c0_53, %c0_54] : memref<128x128xf32, #tpu.memory_space<vmem>>, vector<128x128xf32>
    %c0_55 = arith.constant 0 : index
    %c0_56 = arith.constant 0 : index
    %53 = vector.load %arg3[%c0_55, %c0_56] : memref<1x128xf32, #tpu.memory_space<vmem>>, vector<1x128xf32>
    %c0_57 = arith.constant 0 : index
    %c0_58 = arith.constant 0 : index
    %54 = vector.load %arg4[%c0_57, %c0_58] : memref<1x128xf32, #tpu.memory_space<vmem>>, vector<1x128xf32>
    %cst_59 = arith.constant dense<0.000000e+00> : vector<1x128xf32>
    %55 = tpu.matmul %44, %52, %cst_59 {dimension_numbers = #tpu.dot_dimension_numbers<[1], [0], [0], [1], [0, 0, 1, 1], [], []>} : vector<1x128xf32>, vector<128x128xf32>, vector<1x128xf32> -> vector<1x128xf32>
    %cst_60 = arith.constant 0.001953125 : f32
    %56 = vector.broadcast %cst_60 : f32 to vector<1x128xf32>
    %57 = arith.mulf %55, %56 : vector<1x128xf32>
    %cst_61 = arith.constant dense<0.000000e+00> : vector<1x128xf32>
    %58 = tpu.matmul %51, %52, %cst_61 {dimension_numbers = #tpu.dot_dimension_numbers<[1], [0], [0], [1], [0, 0, 1, 1], [], []>} : vector<1x128xf32>, vector<128x128xf32>, vector<1x128xf32> -> vector<1x128xf32>
    %cst_62 = arith.constant 0.001953125 : f32
    %59 = vector.broadcast %cst_62 : f32 to vector<1x128xf32>
    %60 = arith.mulf %58, %59 : vector<1x128xf32>
    %61 = arith.mulf %57, %57 : vector<1x128xf32>
    %62 = arith.subf %60, %61 : vector<1x128xf32>
    %cst_63 = arith.constant 9.99999974E-6 : f32
    %63 = vector.broadcast %cst_63 : f32 to vector<1x128xf32>
    %64 = arith.addf %62, %63 : vector<1x128xf32>
    %65 = math.rsqrt %64 : vector<1x128xf32>
    %66 = arith.mulf %53, %65 : vector<1x128xf32>
    %67 = arith.mulf %57, %66 : vector<1x128xf32>
    %68 = arith.subf %54, %67 : vector<1x128xf32>
    %69 = vector.broadcast %66 : vector<1x128xf32> to vector<16x128xf32>
    %70 = arith.mulf %22, %69 : vector<16x128xf32>
    %71 = vector.broadcast %68 : vector<1x128xf32> to vector<16x128xf32>
    %72 = arith.addf %70, %71 : vector<16x128xf32>
    %cst_64 = arith.constant 0.000000e+00 : f32
    %73 = vector.broadcast %cst_64 : f32 to vector<16x128xf32>
    %74 = arith.maximumf %72, %73 : vector<16x128xf32>
    %75 = vector.shape_cast %74 : vector<16x128xf32> to vector<2x8x128xf32>
    %76 = vector.broadcast %66 : vector<1x128xf32> to vector<16x128xf32>
    %77 = arith.mulf %39, %76 : vector<16x128xf32>
    %78 = vector.broadcast %68 : vector<1x128xf32> to vector<16x128xf32>
    %79 = arith.addf %77, %78 : vector<16x128xf32>
    %cst_65 = arith.constant 0.000000e+00 : f32
    %80 = vector.broadcast %cst_65 : f32 to vector<16x128xf32>
    %81 = arith.maximumf %79, %80 : vector<16x128xf32>
    %82 = vector.shape_cast %81 : vector<16x128xf32> to vector<2x8x128xf32>
    %c0_66 = arith.constant 0 : index
    %c1_67 = arith.constant 1 : index
    %c0_68 = arith.constant 0 : index
    %83 = vector.load %arg21[%c0_66, %c1_67, %c0_68] : memref<2x9x128xf32, #tpu.memory_space<vmem>>, vector<2x8x128xf32>
    tpu.vector_store %arg21[%c0_66, %c1_67, %c0_68], %82 {strides = array<i32>} : memref<2x9x128xf32, #tpu.memory_space<vmem>>, vector<2x8x128xf32>,
    %84 = arith.maximumf %75, %82 : vector<2x8x128xf32>
    %c0_69 = arith.constant 0 : index
    %c0_70 = arith.constant 0 : index
    %c0_71 = arith.constant 0 : index
    %85 = vector.load %arg21[%c0_69, %c0_70, %c0_71] : memref<2x9x128xf32, #tpu.memory_space<vmem>>, vector<2x8x128xf32>
    %86 = arith.maximumf %84, %85 : vector<2x8x128xf32>
    %87 = vector.shape_cast %86 : vector<2x8x128xf32> to vector<16x128xf32>
    %c0_72 = arith.constant 0 : index
    %c0_73 = arith.constant 0 : index
    %c0_74 = arith.constant 0 : index
    %88 = vector.load %arg6[%c0_72, %c0_73, %c0_74] : memref<3x128x64xf32, #tpu.memory_space<vmem>>, vector<1x128x64xf32>
    %89 = vector.shape_cast %88 : vector<1x128x64xf32> to vector<128x64xf32>
    %cst_75 = arith.constant dense<0.000000e+00> : vector<16x64xf32>
    %90 = tpu.matmul %87, %89, %cst_75 {dimension_numbers = #tpu.dot_dimension_numbers<[1], [0], [0], [1], [0, 0, 1, 1], [], []>} : vector<16x128xf32>, vector<128x64xf32>, vector<16x64xf32> -> vector<16x64xf32>
    %c1_76 = arith.constant 1 : index
    %c0_77 = arith.constant 0 : index
    %c0_78 = arith.constant 0 : index
    %91 = vector.load %arg6[%c1_76, %c0_77, %c0_78] : memref<3x128x64xf32, #tpu.memory_space<vmem>>, vector<1x128x64xf32>
    %92 = vector.shape_cast %91 : vector<1x128x64xf32> to vector<128x64xf32>
    %cst_79 = arith.constant dense<0.000000e+00> : vector<16x64xf32>
    %93 = tpu.matmul %87, %92, %cst_79 {dimension_numbers = #tpu.dot_dimension_numbers<[1], [0], [0], [1], [0, 0, 1, 1], [], []>} : vector<16x128xf32>, vector<128x64xf32>, vector<16x64xf32> -> vector<16x64xf32>
    %94 = arith.maximumf %90, %93 : vector<16x64xf32>
    %c2_80 = arith.constant 2 : index
    %c0_81 = arith.constant 0 : index
    %c0_82 = arith.constant 0 : index
    %95 = vector.load %arg6[%c2_80, %c0_81, %c0_82] : memref<3x128x64xf32, #tpu.memory_space<vmem>>, vector<1x128x64xf32>
    %96 = vector.shape_cast %95 : vector<1x128x64xf32> to vector<128x64xf32>
    %cst_83 = arith.constant dense<0.000000e+00> : vector<16x64xf32>
    %97 = tpu.matmul %87, %96, %cst_83 {dimension_numbers = #tpu.dot_dimension_numbers<[1], [0], [0], [1], [0, 0, 1, 1], [], []>} : vector<16x128xf32>, vector<128x64xf32>, vector<16x64xf32> -> vector<16x64xf32>
    %98 = arith.maximumf %94, %97 : vector<16x64xf32>
    %c0_84 = arith.constant 0 : index
    %c0_85 = arith.constant 0 : index
    %99 = vector.load %arg7[%c0_84, %c0_85] : memref<64x64xf32, #tpu.memory_space<vmem>>, vector<64x64xf32>
    %100 = arith.truncf %98 : vector<16x64xf32> to vector<16x64xbf16>
    %101 = vector.shape_cast %100 : vector<16x64xbf16> to vector<2x8x64xbf16>
    %c0_86 = arith.constant 0 : index
    %c1_87 = arith.constant 1 : index
    %c0_88 = arith.constant 0 : index
    %102 = vector.load %arg22[%c0_86, %c1_87, %c0_88] : memref<2x10x64xbf16, #tpu.memory_space<vmem>>, vector<2x8x64xbf16>
    tpu.vector_store %arg22[%c0_86, %c1_87, %c0_88], %101 {strides = array<i32>} : memref<2x10x64xbf16, #tpu.memory_space<vmem>>, vector<2x8x64xbf16>,
    %c0_89 = arith.constant 0 : index
    %c0_90 = arith.constant 0 : index
    %c0_91 = arith.constant 0 : index
    %103 = vector.load %arg22[%c0_89, %c0_90, %c0_91] : memref<2x10x64xbf16, #tpu.memory_space<vmem>>, vector<2x8x64xbf16>
    %c0_92 = arith.constant 0 : index
    %c0_93 = arith.constant 0 : index
    %c0_94 = arith.constant 0 : index
    %104 = vector.load %arg8[%c0_92, %c0_93, %c0_94] : memref<3x64x64xbf16, #tpu.memory_space<vmem>>, vector<1x64x64xbf16>
    %105 = vector.shape_cast %104 : vector<1x64x64xbf16> to vector<64x64xbf16>
    %106 = vector.shape_cast %103 : vector<2x8x64xbf16> to vector<16x64xbf16>
    %cst_95 = arith.constant dense<0.000000e+00> : vector<16x64xf32>
    %107 = tpu.matmul %106, %105, %cst_95 {dimension_numbers = #tpu.dot_dimension_numbers<[1], [0], [0], [1], [0, 0, 1, 1], [], []>} : vector<16x64xbf16>, vector<64x64xbf16>, vector<16x64xf32> -> vector<16x64xf32>
    %c0_96 = arith.constant 0 : index
    %c1_97 = arith.constant 1 : index
    %c0_98 = arith.constant 0 : index
    %108 = vector.load %arg22[%c0_96, %c1_97, %c0_98] : memref<2x10x64xbf16, #tpu.memory_space<vmem>>, vector<2x8x64xbf16>
    %c1_99 = arith.constant 1 : index
    %c0_100 = arith.constant 0 : index
    %c0_101 = arith.constant 0 : index
    %109 = vector.load %arg8[%c1_99, %c0_100, %c0_101] : memref<3x64x64xbf16, #tpu.memory_space<vmem>>, vector<1x64x64xbf16>
    %110 = vector.shape_cast %109 : vector<1x64x64xbf16> to vector<64x64xbf16>
    %111 = vector.shape_cast %108 : vector<2x8x64xbf16> to vector<16x64xbf16>
    %cst_102 = arith.constant dense<0.000000e+00> : vector<16x64xf32>
    %112 = tpu.matmul %111, %110, %cst_102 {dimension_numbers = #tpu.dot_dimension_numbers<[1], [0], [0], [1], [0, 0, 1, 1], [], []>} : vector<16x64xbf16>, vector<64x64xbf16>, vector<16x64xf32> -> vector<16x64xf32>
    %113 = arith.addf %107, %112 : vector<16x64xf32>
    %c0_103 = arith.constant 0 : index
    %c2_104 = arith.constant 2 : index
    %c0_105 = arith.constant 0 : index
    %114 = vector.load %arg22[%c0_103, %c2_104, %c0_105] : memref<2x10x64xbf16, #tpu.memory_space<vmem>>, vector<2x8x64xbf16>
    %c2_106 = arith.constant 2 : index
    %c0_107 = arith.constant 0 : index
    %c0_108 = arith.constant 0 : index
    %115 = vector.load %arg8[%c2_106, %c0_107, %c0_108] : memref<3x64x64xbf16, #tpu.memory_space<vmem>>, vector<1x64x64xbf16>
    %116 = vector.shape_cast %115 : vector<1x64x64xbf16> to vector<64x64xbf16>
    %117 = vector.shape_cast %114 : vector<2x8x64xbf16> to vector<16x64xbf16>
    %cst_109 = arith.constant dense<0.000000e+00> : vector<16x64xf32>
    %118 = tpu.matmul %117, %116, %cst_109 {dimension_numbers = #tpu.dot_dimension_numbers<[1], [0], [0], [1], [0, 0, 1, 1], [], []>} : vector<16x64xbf16>, vector<64x64xbf16>, vector<16x64xf32> -> vector<16x64xf32>
    %119 = arith.addf %113, %118 : vector<16x64xf32>
    %cst_110 = arith.constant dense<0.000000e+00> : vector<64xf32>
    %120 = vector.multi_reduction <add>, %119, %cst_110 [0] : vector<16x64xf32> to vector<64xf32>
    %121 = vector.shape_cast %120 : vector<64xf32> to vector<1x64xf32>
    %122 = arith.mulf %119, %119 : vector<16x64xf32>
    %cst_111 = arith.constant dense<0.000000e+00> : vector<64xf32>
    %123 = vector.multi_reduction <add>, %122, %cst_111 [0] : vector<16x64xf32> to vector<64xf32>
    %124 = vector.shape_cast %123 : vector<64xf32> to vector<1x64xf32>
    %c0_112 = arith.constant 0 : index
    %c0_113 = arith.constant 0 : index
    %125 = vector.load %arg9[%c0_112, %c0_113] : memref<1x64xf32, #tpu.memory_space<vmem>>, vector<1x64xf32>
    %c0_114 = arith.constant 0 : index
    %c0_115 = arith.constant 0 : index
    %126 = vector.load %arg10[%c0_114, %c0_115] : memref<1x64xf32, #tpu.memory_space<vmem>>, vector<1x64xf32>
    %cst_116 = arith.constant dense<0.000000e+00> : vector<1x64xf32>
    %127 = tpu.matmul %121, %99, %cst_116 {dimension_numbers = #tpu.dot_dimension_numbers<[1], [0], [0], [1], [0, 0, 1, 1], [], []>} : vector<1x64xf32>, vector<64x64xf32>, vector<1x64xf32> -> vector<1x64xf32>
    %cst_117 = arith.constant 7.812500e-03 : f32
    %128 = vector.broadcast %cst_117 : f32 to vector<1x64xf32>
    %129 = arith.mulf %127, %128 : vector<1x64xf32>
    %cst_118 = arith.constant dense<0.000000e+00> : vector<1x64xf32>
    %130 = tpu.matmul %124, %99, %cst_118 {dimension_numbers = #tpu.dot_dimension_numbers<[1], [0], [0], [1], [0, 0, 1, 1], [], []>} : vector<1x64xf32>, vector<64x64xf32>, vector<1x64xf32> -> vector<1x64xf32>
    %cst_119 = arith.constant 7.812500e-03 : f32
    %131 = vector.broadcast %cst_119 : f32 to vector<1x64xf32>
    %132 = arith.mulf %130, %131 : vector<1x64xf32>
    %133 = arith.mulf %129, %129 : vector<1x64xf32>
    %134 = arith.subf %132, %133 : vector<1x64xf32>
    %cst_120 = arith.constant 9.99999974E-6 : f32
    %135 = vector.broadcast %cst_120 : f32 to vector<1x64xf32>
    %136 = arith.addf %134, %135 : vector<1x64xf32>
    %137 = math.rsqrt %136 : vector<1x64xf32>
    %138 = arith.mulf %125, %137 : vector<1x64xf32>
    %139 = arith.mulf %129, %138 : vector<1x64xf32>
    %140 = arith.subf %126, %139 : vector<1x64xf32>
    %141 = vector.broadcast %138 : vector<1x64xf32> to vector<16x64xf32>
    %142 = arith.mulf %119, %141 : vector<16x64xf32>
    %143 = vector.broadcast %140 : vector<1x64xf32> to vector<16x64xf32>
    %144 = arith.addf %142, %143 : vector<16x64xf32>
    %cst_121 = arith.constant 0.000000e+00 : f32
    %145 = vector.broadcast %cst_121 : f32 to vector<16x64xf32>
    %146 = arith.maximumf %144, %145 : vector<16x64xf32>
    %147 = arith.truncf %146 : vector<16x64xf32> to vector<16x64xbf16>
    %148 = vector.shape_cast %147 : vector<16x64xbf16> to vector<2x8x64xbf16>
    %c0_122 = arith.constant 0 : index
    %c1_123 = arith.constant 1 : index
    %c0_124 = arith.constant 0 : index
    %149 = vector.load %arg22[%c0_122, %c1_123, %c0_124] : memref<2x10x64xbf16, #tpu.memory_space<vmem>>, vector<2x8x64xbf16>
    tpu.vector_store %arg22[%c0_122, %c1_123, %c0_124], %148 {strides = array<i32>} : memref<2x10x64xbf16, #tpu.memory_space<vmem>>, vector<2x8x64xbf16>,
    %c0_125 = arith.constant 0 : index
    %c0_126 = arith.constant 0 : index
    %c0_127 = arith.constant 0 : index
    %150 = vector.load %arg22[%c0_125, %c0_126, %c0_127] : memref<2x10x64xbf16, #tpu.memory_space<vmem>>, vector<2x8x64xbf16>
    %c0_128 = arith.constant 0 : index
    %c0_129 = arith.constant 0 : index
    %c0_130 = arith.constant 0 : index
    %151 = vector.load %arg11[%c0_128, %c0_129, %c0_130] : memref<3x64x64xbf16, #tpu.memory_space<vmem>>, vector<1x64x64xbf16>
    %152 = vector.shape_cast %151 : vector<1x64x64xbf16> to vector<64x64xbf16>
    %153 = vector.shape_cast %150 : vector<2x8x64xbf16> to vector<16x64xbf16>
    %cst_131 = arith.constant dense<0.000000e+00> : vector<16x64xf32>
    %154 = tpu.matmul %153, %152, %cst_131 {dimension_numbers = #tpu.dot_dimension_numbers<[1], [0], [0], [1], [0, 0, 1, 1], [], []>} : vector<16x64xbf16>, vector<64x64xbf16>, vector<16x64xf32> -> vector<16x64xf32>
    %c0_132 = arith.constant 0 : index
    %c1_133 = arith.constant 1 : index
    %c0_134 = arith.constant 0 : index
    %155 = vector.load %arg22[%c0_132, %c1_133, %c0_134] : memref<2x10x64xbf16, #tpu.memory_space<vmem>>, vector<2x8x64xbf16>
    %c1_135 = arith.constant 1 : index
    %c0_136 = arith.constant 0 : index
    %c0_137 = arith.constant 0 : index
    %156 = vector.load %arg11[%c1_135, %c0_136, %c0_137] : memref<3x64x64xbf16, #tpu.memory_space<vmem>>, vector<1x64x64xbf16>
    %157 = vector.shape_cast %156 : vector<1x64x64xbf16> to vector<64x64xbf16>
    %158 = vector.shape_cast %155 : vector<2x8x64xbf16> to vector<16x64xbf16>
    %cst_138 = arith.constant dense<0.000000e+00> : vector<16x64xf32>
    %159 = tpu.matmul %158, %157, %cst_138 {dimension_numbers = #tpu.dot_dimension_numbers<[1], [0], [0], [1], [0, 0, 1, 1], [], []>} : vector<16x64xbf16>, vector<64x64xbf16>, vector<16x64xf32> -> vector<16x64xf32>
    %160 = arith.addf %154, %159 : vector<16x64xf32>
    %c0_139 = arith.constant 0 : index
    %c2_140 = arith.constant 2 : index
    %c0_141 = arith.constant 0 : index
    %161 = vector.load %arg22[%c0_139, %c2_140, %c0_141] : memref<2x10x64xbf16, #tpu.memory_space<vmem>>, vector<2x8x64xbf16>
    %c2_142 = arith.constant 2 : index
    %c0_143 = arith.constant 0 : index
    %c0_144 = arith.constant 0 : index
    %162 = vector.load %arg11[%c2_142, %c0_143, %c0_144] : memref<3x64x64xbf16, #tpu.memory_space<vmem>>, vector<1x64x64xbf16>
    %163 = vector.shape_cast %162 : vector<1x64x64xbf16> to vector<64x64xbf16>
    %164 = vector.shape_cast %161 : vector<2x8x64xbf16> to vector<16x64xbf16>
    %cst_145 = arith.constant dense<0.000000e+00> : vector<16x64xf32>
    %165 = tpu.matmul %164, %163, %cst_145 {dimension_numbers = #tpu.dot_dimension_numbers<[1], [0], [0], [1], [0, 0, 1, 1], [], []>} : vector<16x64xbf16>, vector<64x64xbf16>, vector<16x64xf32> -> vector<16x64xf32>
    %166 = arith.addf %160, %165 : vector<16x64xf32>
    %cst_146 = arith.constant dense<0.000000e+00> : vector<64xf32>
    %167 = vector.multi_reduction <add>, %166, %cst_146 [0] : vector<16x64xf32> to vector<64xf32>
    %168 = vector.shape_cast %167 : vector<64xf32> to vector<1x64xf32>
    %169 = arith.mulf %166, %166 : vector<16x64xf32>
    %cst_147 = arith.constant dense<0.000000e+00> : vector<64xf32>
    %170 = vector.multi_reduction <add>, %169, %cst_147 [0] : vector<16x64xf32> to vector<64xf32>
    %171 = vector.shape_cast %170 : vector<64xf32> to vector<1x64xf32>
    %c0_148 = arith.constant 0 : index
    %c0_149 = arith.constant 0 : index
    %172 = vector.load %arg12[%c0_148, %c0_149] : memref<1x64xf32, #tpu.memory_space<vmem>>, vector<1x64xf32>
    %c0_150 = arith.constant 0 : index
    %c0_151 = arith.constant 0 : index
    %173 = vector.load %arg13[%c0_150, %c0_151] : memref<1x64xf32, #tpu.memory_space<vmem>>, vector<1x64xf32>
    %cst_152 = arith.constant dense<0.000000e+00> : vector<1x64xf32>
    %174 = tpu.matmul %168, %99, %cst_152 {dimension_numbers = #tpu.dot_dimension_numbers<[1], [0], [0], [1], [0, 0, 1, 1], [], []>} : vector<1x64xf32>, vector<64x64xf32>, vector<1x64xf32> -> vector<1x64xf32>
    %cst_153 = arith.constant 7.812500e-03 : f32
    %175 = vector.broadcast %cst_153 : f32 to vector<1x64xf32>
    %176 = arith.mulf %174, %175 : vector<1x64xf32>
    %cst_154 = arith.constant dense<0.000000e+00> : vector<1x64xf32>
    %177 = tpu.matmul %171, %99, %cst_154 {dimension_numbers = #tpu.dot_dimension_numbers<[1], [0], [0], [1], [0, 0, 1, 1], [], []>} : vector<1x64xf32>, vector<64x64xf32>, vector<1x64xf32> -> vector<1x64xf32>
    %cst_155 = arith.constant 7.812500e-03 : f32
    %178 = vector.broadcast %cst_155 : f32 to vector<1x64xf32>
    %179 = arith.mulf %177, %178 : vector<1x64xf32>
    %180 = arith.mulf %176, %176 : vector<1x64xf32>
    %181 = arith.subf %179, %180 : vector<1x64xf32>
    %cst_156 = arith.constant 9.99999974E-6 : f32
    %182 = vector.broadcast %cst_156 : f32 to vector<1x64xf32>
    %183 = arith.addf %181, %182 : vector<1x64xf32>
    %184 = math.rsqrt %183 : vector<1x64xf32>
    %185 = arith.mulf %172, %184 : vector<1x64xf32>
    %186 = arith.mulf %176, %185 : vector<1x64xf32>
    %187 = arith.subf %173, %186 : vector<1x64xf32>
    %188 = vector.broadcast %185 : vector<1x64xf32> to vector<16x64xf32>
    %189 = arith.mulf %166, %188 : vector<16x64xf32>
    %190 = vector.broadcast %187 : vector<1x64xf32> to vector<16x64xf32>
    %191 = arith.addf %189, %190 : vector<16x64xf32>
    %192 = arith.addf %191, %98 : vector<16x64xf32>
    %cst_157 = arith.constant 0.000000e+00 : f32
    %193 = vector.broadcast %cst_157 : f32 to vector<16x64xf32>
    %194 = arith.maximumf %192, %193 : vector<16x64xf32>
    %c0_158 = arith.constant 0 : index
    %c0_159 = arith.constant 0 : index
    %195 = vector.load %arg7[%c0_158, %c0_159] : memref<64x64xf32, #tpu.memory_space<vmem>>, vector<64x64xf32>
    %196 = arith.truncf %194 : vector<16x64xf32> to vector<16x64xbf16>
    %197 = vector.shape_cast %196 : vector<16x64xbf16> to vector<2x8x64xbf16>
    %c0_160 = arith.constant 0 : index
    %c1_161 = arith.constant 1 : index
    %c0_162 = arith.constant 0 : index
    %198 = vector.load %arg22[%c0_160, %c1_161, %c0_162] : memref<2x10x64xbf16, #tpu.memory_space<vmem>>, vector<2x8x64xbf16>
    tpu.vector_store %arg22[%c0_160, %c1_161, %c0_162], %197 {strides = array<i32>} : memref<2x10x64xbf16, #tpu.memory_space<vmem>>, vector<2x8x64xbf16>,
    %c0_163 = arith.constant 0 : index
    %c0_164 = arith.constant 0 : index
    %c0_165 = arith.constant 0 : index
    %199 = vector.load %arg22[%c0_163, %c0_164, %c0_165] : memref<2x10x64xbf16, #tpu.memory_space<vmem>>, vector<2x8x64xbf16>
    %c0_166 = arith.constant 0 : index
    %c0_167 = arith.constant 0 : index
    %c0_168 = arith.constant 0 : index
    %200 = vector.load %arg14[%c0_166, %c0_167, %c0_168] : memref<3x64x64xbf16, #tpu.memory_space<vmem>>, vector<1x64x64xbf16>
    %201 = vector.shape_cast %200 : vector<1x64x64xbf16> to vector<64x64xbf16>
    %202 = vector.shape_cast %199 : vector<2x8x64xbf16> to vector<16x64xbf16>
    %cst_169 = arith.constant dense<0.000000e+00> : vector<16x64xf32>
    %203 = tpu.matmul %202, %201, %cst_169 {dimension_numbers = #tpu.dot_dimension_numbers<[1], [0], [0], [1], [0, 0, 1, 1], [], []>} : vector<16x64xbf16>, vector<64x64xbf16>, vector<16x64xf32> -> vector<16x64xf32>
    %c0_170 = arith.constant 0 : index
    %c1_171 = arith.constant 1 : index
    %c0_172 = arith.constant 0 : index
    %204 = vector.load %arg22[%c0_170, %c1_171, %c0_172] : memref<2x10x64xbf16, #tpu.memory_space<vmem>>, vector<2x8x64xbf16>
    %c1_173 = arith.constant 1 : index
    %c0_174 = arith.constant 0 : index
    %c0_175 = arith.constant 0 : index
    %205 = vector.load %arg14[%c1_173, %c0_174, %c0_175] : memref<3x64x64xbf16, #tpu.memory_space<vmem>>, vector<1x64x64xbf16>
    %206 = vector.shape_cast %205 : vector<1x64x64xbf16> to vector<64x64xbf16>
    %207 = vector.shape_cast %204 : vector<2x8x64xbf16> to vector<16x64xbf16>
    %cst_176 = arith.constant dense<0.000000e+00> : vector<16x64xf32>
    %208 = tpu.matmul %207, %206, %cst_176 {dimension_numbers = #tpu.dot_dimension_numbers<[1], [0], [0], [1], [0, 0, 1, 1], [], []>} : vector<16x64xbf16>, vector<64x64xbf16>, vector<16x64xf32> -> vector<16x64xf32>
    %209 = arith.addf %203, %208 : vector<16x64xf32>
    %c0_177 = arith.constant 0 : index
    %c2_178 = arith.constant 2 : index
    %c0_179 = arith.constant 0 : index
    %210 = vector.load %arg22[%c0_177, %c2_178, %c0_179] : memref<2x10x64xbf16, #tpu.memory_space<vmem>>, vector<2x8x64xbf16>
    %c2_180 = arith.constant 2 : index
    %c0_181 = arith.constant 0 : index
    %c0_182 = arith.constant 0 : index
    %211 = vector.load %arg14[%c2_180, %c0_181, %c0_182] : memref<3x64x64xbf16, #tpu.memory_space<vmem>>, vector<1x64x64xbf16>
    %212 = vector.shape_cast %211 : vector<1x64x64xbf16> to vector<64x64xbf16>
    %213 = vector.shape_cast %210 : vector<2x8x64xbf16> to vector<16x64xbf16>
    %cst_183 = arith.constant dense<0.000000e+00> : vector<16x64xf32>
    %214 = tpu.matmul %213, %212, %cst_183 {dimension_numbers = #tpu.dot_dimension_numbers<[1], [0], [0], [1], [0, 0, 1, 1], [], []>} : vector<16x64xbf16>, vector<64x64xbf16>, vector<16x64xf32> -> vector<16x64xf32>
    %215 = arith.addf %209, %214 : vector<16x64xf32>
    %cst_184 = arith.constant dense<0.000000e+00> : vector<64xf32>
    %216 = vector.multi_reduction <add>, %215, %cst_184 [0] : vector<16x64xf32> to vector<64xf32>
    %217 = vector.shape_cast %216 : vector<64xf32> to vector<1x64xf32>
    %218 = arith.mulf %215, %215 : vector<16x64xf32>
    %cst_185 = arith.constant dense<0.000000e+00> : vector<64xf32>
    %219 = vector.multi_reduction <add>, %218, %cst_185 [0] : vector<16x64xf32> to vector<64xf32>
    %220 = vector.shape_cast %219 : vector<64xf32> to vector<1x64xf32>
    %c0_186 = arith.constant 0 : index
    %c0_187 = arith.constant 0 : index
    %221 = vector.load %arg15[%c0_186, %c0_187] : memref<1x64xf32, #tpu.memory_space<vmem>>, vector<1x64xf32>
    %c0_188 = arith.constant 0 : index
    %c0_189 = arith.constant 0 : index
    %222 = vector.load %arg16[%c0_188, %c0_189] : memref<1x64xf32, #tpu.memory_space<vmem>>, vector<1x64xf32>
    %cst_190 = arith.constant dense<0.000000e+00> : vector<1x64xf32>
    %223 = tpu.matmul %217, %195, %cst_190 {dimension_numbers = #tpu.dot_dimension_numbers<[1], [0], [0], [1], [0, 0, 1, 1], [], []>} : vector<1x64xf32>, vector<64x64xf32>, vector<1x64xf32> -> vector<1x64xf32>
    %cst_191 = arith.constant 7.812500e-03 : f32
    %224 = vector.broadcast %cst_191 : f32 to vector<1x64xf32>
    %225 = arith.mulf %223, %224 : vector<1x64xf32>
    %cst_192 = arith.constant dense<0.000000e+00> : vector<1x64xf32>
    %226 = tpu.matmul %220, %195, %cst_192 {dimension_numbers = #tpu.dot_dimension_numbers<[1], [0], [0], [1], [0, 0, 1, 1], [], []>} : vector<1x64xf32>, vector<64x64xf32>, vector<1x64xf32> -> vector<1x64xf32>
    %cst_193 = arith.constant 7.812500e-03 : f32
    %227 = vector.broadcast %cst_193 : f32 to vector<1x64xf32>
    %228 = arith.mulf %226, %227 : vector<1x64xf32>
    %229 = arith.mulf %225, %225 : vector<1x64xf32>
    %230 = arith.subf %228, %229 : vector<1x64xf32>
    %cst_194 = arith.constant 9.99999974E-6 : f32
    %231 = vector.broadcast %cst_194 : f32 to vector<1x64xf32>
    %232 = arith.addf %230, %231 : vector<1x64xf32>
    %233 = math.rsqrt %232 : vector<1x64xf32>
    %234 = arith.mulf %221, %233 : vector<1x64xf32>
    %235 = arith.mulf %225, %234 : vector<1x64xf32>
    %236 = arith.subf %222, %235 : vector<1x64xf32>
    %237 = vector.broadcast %234 : vector<1x64xf32> to vector<16x64xf32>
    %238 = arith.mulf %215, %237 : vector<16x64xf32>
    %239 = vector.broadcast %236 : vector<1x64xf32> to vector<16x64xf32>
    %240 = arith.addf %238, %239 : vector<16x64xf32>
    %cst_195 = arith.constant 0.000000e+00 : f32
    %241 = vector.broadcast %cst_195 : f32 to vector<16x64xf32>
    %242 = arith.maximumf %240, %241 : vector<16x64xf32>
    %243 = arith.truncf %242 : vector<16x64xf32> to vector<16x64xbf16>
    %244 = vector.shape_cast %243 : vector<16x64xbf16> to vector<2x8x64xbf16>
    %c0_196 = arith.constant 0 : index
    %c1_197 = arith.constant 1 : index
    %c0_198 = arith.constant 0 : index
    %245 = vector.load %arg22[%c0_196, %c1_197, %c0_198] : memref<2x10x64xbf16, #tpu.memory_space<vmem>>, vector<2x8x64xbf16>
    tpu.vector_store %arg22[%c0_196, %c1_197, %c0_198], %244 {strides = array<i32>} : memref<2x10x64xbf16, #tpu.memory_space<vmem>>, vector<2x8x64xbf16>,
    %c0_199 = arith.constant 0 : index
    %c0_200 = arith.constant 0 : index
    %c0_201 = arith.constant 0 : index
    %246 = vector.load %arg22[%c0_199, %c0_200, %c0_201] : memref<2x10x64xbf16, #tpu.memory_space<vmem>>, vector<2x8x64xbf16>
    %c0_202 = arith.constant 0 : index
    %c0_203 = arith.constant 0 : index
    %c0_204 = arith.constant 0 : index
    %247 = vector.load %arg17[%c0_202, %c0_203, %c0_204] : memref<3x64x64xbf16, #tpu.memory_space<vmem>>, vector<1x64x64xbf16>
    %248 = vector.shape_cast %247 : vector<1x64x64xbf16> to vector<64x64xbf16>
    %249 = vector.shape_cast %246 : vector<2x8x64xbf16> to vector<16x64xbf16>
    %cst_205 = arith.constant dense<0.000000e+00> : vector<16x64xf32>
    %250 = tpu.matmul %249, %248, %cst_205 {dimension_numbers = #tpu.dot_dimension_numbers<[1], [0], [0], [1], [0, 0, 1, 1], [], []>} : vector<16x64xbf16>, vector<64x64xbf16>, vector<16x64xf32> -> vector<16x64xf32>
    %c0_206 = arith.constant 0 : index
    %c1_207 = arith.constant 1 : index
    %c0_208 = arith.constant 0 : index
    %251 = vector.load %arg22[%c0_206, %c1_207, %c0_208] : memref<2x10x64xbf16, #tpu.memory_space<vmem>>, vector<2x8x64xbf16>
    %c1_209 = arith.constant 1 : index
    %c0_210 = arith.constant 0 : index
    %c0_211 = arith.constant 0 : index
    %252 = vector.load %arg17[%c1_209, %c0_210, %c0_211] : memref<3x64x64xbf16, #tpu.memory_space<vmem>>, vector<1x64x64xbf16>
    %253 = vector.shape_cast %252 : vector<1x64x64xbf16> to vector<64x64xbf16>
    %254 = vector.shape_cast %251 : vector<2x8x64xbf16> to vector<16x64xbf16>
    %cst_212 = arith.constant dense<0.000000e+00> : vector<16x64xf32>
    %255 = tpu.matmul %254, %253, %cst_212 {dimension_numbers = #tpu.dot_dimension_numbers<[1], [0], [0], [1], [0, 0, 1, 1], [], []>} : vector<16x64xbf16>, vector<64x64xbf16>, vector<16x64xf32> -> vector<16x64xf32>
    %256 = arith.addf %250, %255 : vector<16x64xf32>
    %c0_213 = arith.constant 0 : index
    %c2_214 = arith.constant 2 : index
    %c0_215 = arith.constant 0 : index
    %257 = vector.load %arg22[%c0_213, %c2_214, %c0_215] : memref<2x10x64xbf16, #tpu.memory_space<vmem>>, vector<2x8x64xbf16>
    %c2_216 = arith.constant 2 : index
    %c0_217 = arith.constant 0 : index
    %c0_218 = arith.constant 0 : index
    %258 = vector.load %arg17[%c2_216, %c0_217, %c0_218] : memref<3x64x64xbf16, #tpu.memory_space<vmem>>, vector<1x64x64xbf16>
    %259 = vector.shape_cast %258 : vector<1x64x64xbf16> to vector<64x64xbf16>
    %260 = vector.shape_cast %257 : vector<2x8x64xbf16> to vector<16x64xbf16>
    %cst_219 = arith.constant dense<0.000000e+00> : vector<16x64xf32>
    %261 = tpu.matmul %260, %259, %cst_219 {dimension_numbers = #tpu.dot_dimension_numbers<[1], [0], [0], [1], [0, 0, 1, 1], [], []>} : vector<16x64xbf16>, vector<64x64xbf16>, vector<16x64xf32> -> vector<16x64xf32>
    %262 = arith.addf %256, %261 : vector<16x64xf32>
    %cst_220 = arith.constant dense<0.000000e+00> : vector<64xf32>
    %263 = vector.multi_reduction <add>, %262, %cst_220 [0] : vector<16x64xf32> to vector<64xf32>
    %264 = vector.shape_cast %263 : vector<64xf32> to vector<1x64xf32>
    %265 = arith.mulf %262, %262 : vector<16x64xf32>
    %cst_221 = arith.constant dense<0.000000e+00> : vector<64xf32>
    %266 = vector.multi_reduction <add>, %265, %cst_221 [0] : vector<16x64xf32> to vector<64xf32>
    %267 = vector.shape_cast %266 : vector<64xf32> to vector<1x64xf32>
    %c0_222 = arith.constant 0 : index
    %c0_223 = arith.constant 0 : index
    %268 = vector.load %arg18[%c0_222, %c0_223] : memref<1x64xf32, #tpu.memory_space<vmem>>, vector<1x64xf32>
    %c0_224 = arith.constant 0 : index
    %c0_225 = arith.constant 0 : index
    %269 = vector.load %arg19[%c0_224, %c0_225] : memref<1x64xf32, #tpu.memory_space<vmem>>, vector<1x64xf32>
    %cst_226 = arith.constant dense<0.000000e+00> : vector<1x64xf32>
    %270 = tpu.matmul %264, %195, %cst_226 {dimension_numbers = #tpu.dot_dimension_numbers<[1], [0], [0], [1], [0, 0, 1, 1], [], []>} : vector<1x64xf32>, vector<64x64xf32>, vector<1x64xf32> -> vector<1x64xf32>
    %cst_227 = arith.constant 7.812500e-03 : f32
    %271 = vector.broadcast %cst_227 : f32 to vector<1x64xf32>
    %272 = arith.mulf %270, %271 : vector<1x64xf32>
    %cst_228 = arith.constant dense<0.000000e+00> : vector<1x64xf32>
    %273 = tpu.matmul %267, %195, %cst_228 {dimension_numbers = #tpu.dot_dimension_numbers<[1], [0], [0], [1], [0, 0, 1, 1], [], []>} : vector<1x64xf32>, vector<64x64xf32>, vector<1x64xf32> -> vector<1x64xf32>
    %cst_229 = arith.constant 7.812500e-03 : f32
    %274 = vector.broadcast %cst_229 : f32 to vector<1x64xf32>
    %275 = arith.mulf %273, %274 : vector<1x64xf32>
    %276 = arith.mulf %272, %272 : vector<1x64xf32>
    %277 = arith.subf %275, %276 : vector<1x64xf32>
    %cst_230 = arith.constant 9.99999974E-6 : f32
    %278 = vector.broadcast %cst_230 : f32 to vector<1x64xf32>
    %279 = arith.addf %277, %278 : vector<1x64xf32>
    %280 = math.rsqrt %279 : vector<1x64xf32>
    %281 = arith.mulf %268, %280 : vector<1x64xf32>
    %282 = arith.mulf %272, %281 : vector<1x64xf32>
    %283 = arith.subf %269, %282 : vector<1x64xf32>
    %284 = vector.broadcast %281 : vector<1x64xf32> to vector<16x64xf32>
    %285 = arith.mulf %262, %284 : vector<16x64xf32>
    %286 = vector.broadcast %283 : vector<1x64xf32> to vector<16x64xf32>
    %287 = arith.addf %285, %286 : vector<16x64xf32>
    %288 = arith.addf %287, %194 : vector<16x64xf32>
    %cst_231 = arith.constant 0.000000e+00 : f32
    %289 = vector.broadcast %cst_231 : f32 to vector<16x64xf32>
    %290 = arith.maximumf %288, %289 : vector<16x64xf32>
    %291 = vector.shape_cast %290 : vector<16x64xf32> to vector<2x8x64xf32>
    %c0_232 = arith.constant 0 : index
    %c0_233 = arith.constant 0 : index
    %c0_234 = arith.constant 0 : index
    %292 = vector.load %arg20[%c0_232, %c0_233, %c0_234] : memref<2x8x64xf32, #tpu.memory_space<vmem>>, vector<2x8x64xf32>
    tpu.vector_store %arg20[%c0_232, %c0_233, %c0_234], %291 {strides = array<i32>} : memref<2x8x64xf32, #tpu.memory_space<vmem>>, vector<2x8x64xf32>,
    return
  }
}

</mosaic_0001>

<bundles_post_ra>
// kernel: conv_sequence.1
= control target key start
LH: loop header
LB: loop body
LE: loop exit
PB: predicated region body
PF: predicated region fallthrough
CT: control target
= control target key end

     0   :  { %v4559_v0 = vmov 0.0   ;;  %vm4560_vm0 = vmmov 0   ;;  %vm266_vm1 = vsmask.f32 3328  ;;  %vm267_vm2 = vsmask.f32 7440  ;;  %s5600_s2 = inlined_call_operand.vmem [shape: bf16[3,64,128], index: 2, kind: input, shape index: {}]   ;;  %s5601_s1 = inlined_call_operand.vmem [shape: bf16[2,9,64], index: 1, kind: input, shape index: {}]   ;;  %s5602_s0 = inlined_call_operand.vmem [shape: bf16[2,9,64], index: 0, kind: input, shape index: {}]   ;;  %s5603_s5 = inlined_call_operand.vmem [shape: f32[128,128], index: 5, kind: input, shape index: {}]   ;;  %s5604_s6 = inlined_call_operand.vmem [shape: f32[3,128,64], index: 6, kind: input, shape index: {}]   ;;  %s5605_s3 = inlined_call_operand.vmem [shape: f32[1,128], index: 3, kind: input, shape index: {}]   ;;  %s5606_s4 = inlined_call_operand.vmem [shape: f32[1,128], index: 4, kind: input, shape index: {}]   ;;  %s5607_s8 = inlined_call_operand.vmem [shape: bf16[3,64,64], index: 8, kind: input, shape index: {}]   ;;  %s5608_s7 = inlined_call_operand.vmem [shape: f32[64,64], index: 7, kind: input, shape index: {}]   ;;  %s5609_s11 = inlined_call_operand.vmem [shape: bf16[3,64,64], index: 11, kind: input, shape index: {}]   ;;  %s5610_s9 = inlined_call_operand.vmem [shape: f32[1,64], index: 9, kind: input, shape index: {}]   ;;  %s5611_s10 = inlined_call_operand.vmem [shape: f32[1,64], index: 10, kind: input, shape index: {}]   ;;  %s5612_s14 = inlined_call_operand.vmem [shape: bf16[3,64,64], index: 14, kind: input, shape index: {}]   ;;  %s5613_s12 = inlined_call_operand.vmem [shape: f32[1,64], index: 12, kind: input, shape index: {}]   ;;  %s5614_s13 = inlined_call_operand.vmem [shape: f32[1,64], index: 13, kind: input, shape index: {}]   ;;  %s5615_s17 = inlined_call_operand.vmem [shape: bf16[3,64,64], index: 17, kind: input, shape index: {}]   ;;  %s5616_s15 = inlined_call_operand.vmem [shape: f32[1,64], index: 15, kind: input, shape index: {}]   ;;  %s5617_s16 = inlined_call_operand.vmem [shape: f32[1,64], index: 16, kind: input, shape index: {}]   ;;  %s5618_s18 = inlined_call_operand.vmem [shape: f32[1,64], index: 18, kind: input, shape index: {}]   ;;  %s5619_s19 = inlined_call_operand.vmem [shape: f32[1,64], index: 19, kind: input, shape index: {}]   ;;  %s5620_s20 = inlined_call_operand.vmem [shape: f32[2,8,64], index: 20, kind: output, shape index: {}]  }
   0x1   :  { %5626 = sst [smem:[#allocation4_spill]] %s5600_s2  ;;  %3649 = vmatprep.subr.bf16.mxu0 %v4559_v0  ;;  %66 = vst [vmem:[#allocation2] sm:$0x1] %v4559_v0  ;;  %67 = vst [vmem:[#allocation2 + $0x10] sm:$0x1] %v4559_v0  ;;  %3685 = vmatprep.subr.bf16.mxu1 %v4559_v0  ;;  %vm135_vm4 = vcmask 523264  }
   0x2   :  { %5627 = sst [smem:[#allocation5_spill]] %s5601_s1  ;;  %s5631_s23 = sld [smem:[#allocation4_spill]]  ;;  %3657 = vmatprep.mubr.msk.bf16.mxu0 %vm4560_vm0, %v4559_v0  ;;  %3693 = vmatprep.mubr.msk.bf16.mxu1 %vm4560_vm0, %v4559_v0  ;;  %vm4706_vm3 = vmor %vm266_vm1, %vm267_vm2  ;;  %vm68_vm5 = vcmask 516096   ;;  %vm69_vm6 = vsmask.f32 256  ;;  %vm1079_vm10 = vcmask 519168  }
   0x3   :  { %5628 = sst [smem:[#allocation6_spill]] %s5602_s0  ;;  %vm5046_vm7 = vmand %vm68_vm5, %vm69_vm6  ;;  %vm77_vm8 = vsmask.f32 7938  ;;  %vm1301_vm12 = vcmask 1042432   ;;  %vm1302_vm13 = vcmask 1046532   ;;  %v4542_v21 = vld [vmem:[%s5615_s17 + $0x10] sm:$0xff]  }
   0x4   :  { %5629 = sst [smem:[#allocation7_spill]] %s5603_s5  ;;  %s5632_s28 = sld [smem:[#allocation6_spill]]  ;;  %vm78_vm9 = vmand %vm68_vm5, %vm77_vm8 }
   0x5   :  { %5630 = sst [smem:[#allocation8_spill]] %s5604_s6  ;;  %s5635_s5 = sld [smem:[#allocation5_spill]]  ;;  %vm5080_vm11 = vmand %vm1079_vm10, %vm77_vm8 }
   0x6   :  { %s5636_s6 = sld [smem:[#allocation7_spill]]  ;;  %s5637_s2 = sld [smem:[#allocation8_spill]]  ;;  %vm5134_vm14 = vmor %vm1301_vm12, %vm1302_vm13 }
   0x8   :  { %v4483_v1 = vld [vmem:[%s5631_s23 + $0x20] sm:$0xff]   ;;  %v4484_v2 = vld [vmem:[%s5631_s23 + $0x28] sm:$0xff]   ;;  %v4485_v3 = vld [vmem:[%s5631_s23 + $0x30] sm:$0xff]  }
   0x9   :  { %3650 = vmatpush3.bf16.msra.mxu0 %v4483_v1  ;;  %3686 = vmatpush3.bf16.msra.mxu1 %v4483_v1  ;;  %v4486_v16 = vld [vmem:[%s5631_s23 + $0x38] sm:$0xff]   ;;  %v4488_v26 = vld [vmem:[%s5631_s23] sm:$0xff]   ;;  %v4489_v31 = vld [vmem:[%s5631_s23 + $0x8] sm:$0xff]  }
   0xa   :  { %3651 = vmatprep.subr.bf16.mxu0 %v4559_v0  ;;  %3687 = vmatprep.subr.bf16.mxu1 %v4559_v0  ;;  %v253_v4 = vld [vmem:[%s5632_s28] sm:$0xf]  ;;  %v254_v5 = vld [vmem:[%s5632_s28 + $0x4] sm:$0x1]  ;;  %v255_v6 = vld [vmem:[%s5632_s28 + $0x8] sm:$0xf] }
   0xb   :  { %v256_v7 = vld [vmem:[%s5632_s28 + $0xc] sm:$0x1]  ;;  %v270_v8 = vshrl.u32 %v253_v4, 16  ;;  %v273_v9 = vshll.u32 %v253_v4, 16  ;;  %v279_v10 = vshll.u32 %v254_v5, 16  ;;  %v284_v11 = vshrl.u32 %v255_v6, 16 }
   0xc   :  { %v287_v12 = vshll.u32 %v255_v6, 16  ;;  %v293_v13 = vshll.u32 %v256_v7, 16  ;;  %v4487_v24 = vld [vmem:[%s5635_s5] ss:$8 sps:$4 sm:$0xff]   ;;  %v4490_v32 = vld [vmem:[%s5631_s23 + $0x10] sm:$0xff]   ;;  %v4491_v35 = vld [vmem:[%s5631_s23 + $0x18] sm:$0xff]  }
   0xd   :  { %3652 = vmatpush3.bf16.msra.mxu0 %v4484_v2  ;;  %3688 = vmatpush3.bf16.msra.mxu1 %v4484_v2  ;;  %v272_v14 = vrot.slane %v270_v8, 4  ;;  %v275_v15 = vrot.slane %v273_v9, 5  ;;  %v281_v17 = vrot.slane %v279_v10, 5  ;;  %v286_v18 = vrot.slane %v284_v11, 4  ;;  %v452_v33 = vld [vmem:[%s5635_s5] sm:$0xf] }
   0xe   :  { %3653 = vmatprep.subr.bf16.mxu0 %v4559_v0  ;;  %3689 = vmatprep.subr.bf16.mxu1 %v4559_v0  ;;  %v289_v19 = vrot.slane %v287_v12, 5  ;;  %v295_v23 = vrot.slane %v293_v13, 5  ;;  %v454_v34 = vld [vmem:[%s5635_s5 + $0x8] sm:$0xf]  ;;  %v457_v36 = vshrl.u32 %v452_v33, 16  ;;  %v460_v37 = vshll.u32 %v452_v33, 16 }
   0xf   :  { %v276_v20 = vor.u32 %v275_v15, %v272_v14  ;;  %v471_v38 = vshrl.u32 %v454_v34, 16  ;;  %v474_v39 = vshll.u32 %v454_v34, 16  ;;  %v4492_v40 = vld [vmem:[%s5632_s28] ss:$8 sps:$4 sm:$0xff]   ;;  %v453_v46 = vld [vmem:[%s5635_s5 + $0x4] sm:$0x1] }
  0x10   :  { %v290_v22 = vor.u32 %v289_v19, %v286_v18  ;;  %v4493_v41 = vld [vmem:[%s5631_s23 + $0x40] sm:$0xff]   ;;  %v459_v42 = vrot.slane %v457_v36, 4  ;;  %v462_v43 = vrot.slane %v460_v37, 5  ;;  %v455_v47 = vld [vmem:[%s5635_s5 + $0xc] sm:$0x1]  ;;  %v466_v50 = vshll.u32 %v453_v46, 16 }
  0x11   :  { %3654 = vmatpush3.bf16.msra.mxu0 %v4485_v3  ;;  %3690 = vmatpush3.bf16.msra.mxu1 %v4485_v3  ;;  %v277_v25 = vrot.slane %v276_v20, 4  ;;  %v473_v44 = vrot.slane %v471_v38, 4  ;;  %v476_v45 = vrot.slane %v474_v39, 5  ;;  %v4494_v48 = vld [vmem:[%s5631_s23 + $0x48] sm:$0xff]   ;;  %v480_v52 = vshll.u32 %v455_v47, 16  ;;  %v4495_v53 = vld [vmem:[%s5631_s23 + $0x50] sm:$0xff]  }
  0x12   :  { %3655 = vmatprep.subr.bf16.mxu0 %v4559_v0  ;;  %3691 = vmatprep.subr.bf16.mxu1 %v4559_v0  ;;  %v291_v27 = vrot.slane %v290_v22, 4  ;;  %v463_v49 = vor.u32 %v462_v43, %v459_v42  ;;  %v468_v55 = vrot.slane %v466_v50, 5  ;;  %v4496_v58 = vld [vmem:[%s5631_s23 + $0x58] sm:$0xff]   ;;  %v567_v59 = vld [vmem:[%s5636_s6] sm:$0xff]  ;;  %v568_v60 = vld [vmem:[%s5636_s6 + $0x8] sm:$0xff]  ;;  %v4561_v2 = vmov 0.0|0.0  }
  0x13   :  { %v282_v28 = vsel %vm4706_vm3, %v277_v25, %v281_v17  ;;  %v477_v51 = vor.u32 %v476_v45, %v473_v44  ;;  %v482_v57 = vrot.slane %v480_v52, 5  ;;  %v4193_v63 = vpack.c.bf16 %v568_v60, %v567_v59  ;;  %v569_v3 = vld [vmem:[%s5636_s6 + $0x10] sm:$0xff]  ;;  %v570_v4 = vld [vmem:[%s5636_s6 + $0x18] sm:$0xff]  ;;  %v571_v6 = vld [vmem:[%s5636_s6 + $0x20] sm:$0xff] }
  0x14   :  { %v296_v29 = vsel %vm4706_vm3, %v291_v27, %v295_v23  ;;  %v464_v54 = vrot.slane %v463_v49, 4  ;;  %v4196_v5 = vpack.c.bf16 %v570_v4, %v569_v3  ;;  %v572_v7 = vld [vmem:[%s5636_s6 + $0x28] sm:$0xff]  ;;  %v573_v9 = vld [vmem:[%s5636_s6 + $0x30] sm:$0xff]  ;;  %v574_v10 = vld [vmem:[%s5636_s6 + $0x38] sm:$0xff] }
  0x15   :  { %3656 = vmatpush3.bf16.msra.mxu0 %v4486_v16  ;;  %3692 = vmatpush3.bf16.msra.mxu1 %v4486_v16  ;;  %v4723_v30 = vcombine.low %v282_v28, %v296_v29  ;;  %v478_v56 = vrot.slane %v477_v51, 4  ;;  %v4199_v8 = vpack.c.bf16 %v572_v7, %v571_v6  ;;  %v4202_v11 = vpack.c.bf16 %v574_v10, %v573_v9  ;;  %v575_v12 = vld [vmem:[%s5636_s6 + $0x40] sm:$0xff]  ;;  %v576_v13 = vld [vmem:[%s5636_s6 + $0x48] sm:$0xff]  ;;  %v577_v15 = vld [vmem:[%s5636_s6 + $0x50] sm:$0xff] }
  0x16   :  { %3661 = vmatprep.subr.bf16.mxu0 %v4559_v0  ;;  %3697 = vmatprep.subr.bf16.mxu1 %v4559_v0  ;;  %v469_v61 = vsel %vm4706_vm3, %v464_v54, %v468_v55  ;;  %v4205_v14 = vpack.c.bf16 %v576_v13, %v575_v12  ;;  %v578_v16 = vld [vmem:[%s5636_s6 + $0x58] sm:$0xff]  ;;  %v579_v18 = vld [vmem:[%s5636_s6 + $0x60] sm:$0xff]  ;;  %v580_v19 = vld [vmem:[%s5636_s6 + $0x68] sm:$0xff] }
  0x17   :  { %v483_v62 = vsel %vm4706_vm3, %v478_v56, %v482_v57  ;;  %v4208_v17 = vpack.c.bf16 %v578_v16, %v577_v15  ;;  %v4211_v20 = vpack.c.bf16 %v580_v19, %v579_v18  ;;  %v581_v22 = vld [vmem:[%s5636_s6 + $0x70] sm:$0xff]  ;;  %v582_v23 = vld [vmem:[%s5636_s6 + $0x78] sm:$0xff]  ;;  %v767_v6 = vld [vmem:[%s5637_s2 + $0x8] sm:$0xff] }
  0x18   :  { %3658 = vmatmul.mubr.msk.bf16.vlgmr.msra.gmra.mrb[0].mxu0 %vm135_vm4, %v4487_v24  ;;  %3694 = vmatmul.mubr.msk.bf16.vlgmr.msra.gmra.mrb[0].mxu1 %vm135_vm4, %v4723_v30  ;;  %v3197_v1 = vcombine.low %v469_v61, %v483_v62  ;;  %v3200_v9 = vld [vmem:[%s5637_s2 + $0x88] sm:$0xff]  ;;  %v769_v12 = vld [vmem:[%s5637_s2 + $0x18] sm:$0xff] }
  0x19   :  { %3662 = vmatpush3.bf16.msra.mxu0 %v4488_v26  ;;  %3669 = vmatprep.mubr.msk.bf16.mxu0 %vm4560_vm0, %v4559_v0  ;;  %v3202_v15 = vld [vmem:[%s5637_s2 + $0x98] sm:$0xff]  ;;  %v771_v18 = vld [vmem:[%s5637_s2 + $0x28] sm:$0xff] }
  0x1a   :  { %3663 = vmatprep.subr.bf16.mxu0 %v4559_v0  ;;  %3698 = vmatpush3.bf16.msra.mxu1 %v4488_v26 }
  0x1b   :  { %3705 = vmatprep.mubr.msk.bf16.mxu1 %vm4560_vm0, %v4559_v0  ;;  %3699 = vmatprep.subr.bf16.mxu1 %v4559_v0 }
  0x1d   :  { %3664 = vmatpush3.bf16.msra.mxu0 %v4489_v31 }
  0x1e   :  { %3665 = vmatprep.subr.bf16.mxu0 %v4559_v0  ;;  %3700 = vmatpush3.bf16.msra.mxu1 %v4489_v31 }
  0x1f   :  { %3701 = vmatprep.subr.bf16.mxu1 %v4559_v0 }
  0x21   :  { %3666 = vmatpush3.bf16.msra.mxu0 %v4490_v32 }
  0x22   :  { %3667 = vmatprep.subr.bf16.mxu0 %v4559_v0  ;;  %3702 = vmatpush3.bf16.msra.mxu1 %v4490_v32 }
  0x23   :  { %3703 = vmatprep.subr.bf16.mxu1 %v4559_v0 }
  0x25   :  { %3668 = vmatpush3.bf16.msra.mxu0 %v4491_v35 }
  0x26   :  { %3673 = vmatprep.subr.bf16.mxu0 %v4559_v0  ;;  %3704 = vmatpush3.bf16.msra.mxu1 %v4491_v35 }
  0x27   :  { %3709 = vmatprep.subr.bf16.mxu1 %v4559_v0 }
  0x28   :  { %3670 = vmatmul.mubr.msk.bf16.vlgmr.msra.gmra.mrb[0].mxu0 %vm135_vm4, %v4492_v40 }
  0x29   :  { %3674 = vmatpush3.bf16.msra.mxu0 %v4493_v41  ;;  %3681 = vmatprep.mubr.msk.bf16.mxu0 %vm4560_vm0, %v4559_v0 }
  0x2a   :  { %3706 = vmatmul.mubr.msk.bf16.vlgmr.msra.gmra.mrb[0].mxu1 %vm135_vm4, %v4487_v24  ;;  %3675 = vmatprep.subr.bf16.mxu0 %v4559_v0  ;;  %v4214_v24 = vpack.c.bf16 %v582_v23, %v581_v22  ;;  %v3204_v22 = vld [vmem:[%s5637_s2 + $0xa8] sm:$0xff] }
  0x2b   :  { %3710 = vmatpush3.bf16.msra.mxu1 %v4493_v41  ;;  %3717 = vmatprep.mubr.msk.bf16.mxu1 %vm4560_vm0, %v4559_v0 }
  0x2c   :  { %3711 = vmatprep.subr.bf16.mxu1 %v4559_v0 }
  0x2d   :  { %3676 = vmatpush3.bf16.msra.mxu0 %v4494_v48 }
  0x2e   :  { %3677 = vmatprep.subr.bf16.mxu0 %v4559_v0 }
  0x2f   :  { %3712 = vmatpush3.bf16.msra.mxu1 %v4494_v48 }
  0x30   :  { %3713 = vmatprep.subr.bf16.mxu1 %v4559_v0 }
  0x31   :  { %3678 = vmatpush3.bf16.msra.mxu0 %v4495_v53 }
  0x32   :  { %3679 = vmatprep.subr.bf16.mxu0 %v4559_v0 }
  0x33   :  { %3714 = vmatpush3.bf16.msra.mxu1 %v4495_v53 }
  0x34   :  { %3715 = vmatprep.subr.bf16.mxu1 %v4559_v0 }
  0x35   :  { %3680 = vmatpush3.bf16.msra.mxu0 %v4496_v58 }
  0x36   :  { %4192 = vmatprep.subr.bf16.mxu0 %v4561_v2 }
  0x37   :  { %3716 = vmatpush3.bf16.msra.mxu1 %v4496_v58 }
  0x38   :  { %3682 = vmatmul.mubr.msk.bf16.vlgmr.msra.gmra.mrb[0].mxu0 %vm135_vm4, %v4723_v30  ;;  %4216 = vmatprep.subr.bf16.mxu1 %v4561_v2 }
  0x39   :  { %4194 = vmatpush3.bf16.msra.mxu0 %v4193_v63  ;;  %3753 = vmatprep.mubr.msk.f32.mxu0 %vm4560_vm0, %v4559_v0 }
  0x3a   :  { %3718 = vmatmul.mubr.msk.bf16.vlgmr.msra.gmra.mrb[0].mxu1 %vm135_vm4, %v3197_v1  ;;  %4195 = vmatprep.subr.bf16.mxu0 %v4561_v2 }
  0x3b   :  { %4218 = vmatpush3.bf16.msra.mxu1 %v4193_v63  ;;  %3788 = vmatprep.mubr.msk.f32.mxu1 %vm4560_vm0, %v4559_v0 }
  0x3c   :  { %4219 = vmatprep.subr.bf16.mxu1 %v4561_v2 }
  0x3d   :  { %4197 = vmatpush3.bf16.msra.mxu0 %v4196_v5 }
  0x3e   :  { %4198 = vmatprep.subr.bf16.mxu0 %v4561_v2 }
  0x3f   :  { %4221 = vmatpush3.bf16.msra.mxu1 %v4196_v5  ;;  %v766_v5 = vld [vmem:[%s5637_s2] sm:$0xff] }
  0x40   :  { %4222 = vmatprep.subr.bf16.mxu1 %v4561_v2  ;;  %v4240_v7 = vpack.c.bf16 %v767_v6, %v766_v5 }
  0x41   :  { %4200 = vmatpush3.bf16.msra.mxu0 %v4199_v8 }
  0x42   :  { %4201 = vmatprep.subr.bf16.mxu0 %v4561_v2 }
  0x43   :  { %4224 = vmatpush3.bf16.msra.mxu1 %v4199_v8  ;;  %v3199_v8 = vld [vmem:[%s5637_s2 + $0x80] sm:$0xff] }
  0x44   :  { %4225 = vmatprep.subr.bf16.mxu1 %v4561_v2  ;;  %v4272_v10 = vpack.c.bf16 %v3200_v9, %v3199_v8  ;;  %v735_v8 = vlaneseq }
  0x45   :  { %4203 = vmatpush3.bf16.msra.mxu0 %v4202_v11 }
  0x46   :  { %4204 = vmatprep.subr.bf16.mxu0 %v4561_v2  ;;  %v736_v9 = vshrl.u32 %v735_v8, 7  ;;  %v4499_v8 = vld [vmem:[%s5607_s8 + $0x30] sm:$0xff]  }
  0x47   :  { %4227 = vmatpush3.bf16.msra.mxu1 %v4202_v11  ;;  %v768_v11 = vld [vmem:[%s5637_s2 + $0x10] sm:$0xff] }
  0x48   :  { %4228 = vmatprep.subr.bf16.mxu1 %v4561_v2  ;;  %v4244_v13 = vpack.c.bf16 %v769_v12, %v768_v11  ;;  %v4988_v11 = vsub.s32 0, %v736_v9  ;;  %v4500_v9 = vld [vmem:[%s5607_s8 + $0x38] sm:$0xff]  }
  0x49   :  { %4206 = vmatpush3.bf16.msra.mxu0 %v4205_v14 }
  0x4a   :  { %4207 = vmatprep.subr.bf16.mxu0 %v4561_v2 }
  0x4b   :  { %4230 = vmatpush3.bf16.msra.mxu1 %v4205_v14  ;;  %v3201_v14 = vld [vmem:[%s5637_s2 + $0x90] sm:$0xff] }
  0x4c   :  { %4231 = vmatprep.subr.bf16.mxu1 %v4561_v2  ;;  %v4276_v16 = vpack.c.bf16 %v3202_v15, %v3201_v14  ;;  %v584_v14 = vld [vmem:[%s5606_s4] sm:$0x1] }
  0x4d   :  { %4209 = vmatpush3.bf16.msra.mxu0 %v4208_v17 }
  0x4e   :  { %4210 = vmatprep.subr.bf16.mxu0 %v4561_v2 }
  0x4f   :  { %4233 = vmatpush3.bf16.msra.mxu1 %v4208_v17  ;;  %v770_v17 = vld [vmem:[%s5637_s2 + $0x20] sm:$0xff] }
  0x50   :  { %4234 = vmatprep.subr.bf16.mxu1 %v4561_v2  ;;  %v4248_v19 = vpack.c.bf16 %v771_v18, %v770_v17 }
  0x51   :  { %4212 = vmatpush3.bf16.msra.mxu0 %v4211_v20 }
  0x52   :  { %4213 = vmatprep.subr.bf16.mxu0 %v4561_v2 }
  0x53   :  { %4236 = vmatpush3.bf16.msra.mxu1 %v4211_v20  ;;  %v3203_v20 = vld [vmem:[%s5637_s2 + $0xa0] sm:$0xff] }
  0x54   :  { %4237 = vmatprep.subr.bf16.mxu1 %v4561_v2  ;;  %v4280_v23 = vpack.c.bf16 %v3204_v22, %v3203_v20 }
  0x55   :  { %4215 = vmatpush3.bf16.msra.mxu0 %v4214_v24 }
  0x56   :  { %4241 = vmatprep.subr.bf16.mxu0 %v4240_v7 }
  0x57   :  { %4239 = vmatpush3.bf16.msra.mxu1 %v4214_v24  ;;  %v772_v24 = vld [vmem:[%s5637_s2 + $0x30] sm:$0xff] }
  0x58   :  { %4273 = vmatprep.subr.bf16.mxu1 %v4272_v10 }
 0x10b   :  { %v4862_v25 = vpop.f32.mrb[0].mxu0 }
 0x10c   :  { %v3683_v26 = vpop.f32.mrb[1].mxu0  ;;  %v548_v29 = vmul.f32 %v4862_v25, %v4862_v25 }
 0x10d   :  { %v4864_v27 = vpop.f32.mrb[0].mxu1  ;;  %v4866_v28 = vpop.f32.mrb[2].mxu0  ;;  %v773_v26 = vld [vmem:[%s5637_s2 + $0x38] sm:$0xff] }
 0x10e   :  { %v3719_v30 = vpop.f32.mrb[1].mxu1  ;;  %v533_v31 = vadd.f32 %v4866_v28, %v4862_v25  ;;  %v549_v32 = vmul.f32 %v4866_v28, %v4866_v28  ;;  %v3684_v33 = vpop.f32.mrb[3].mxu0  ;;  %v557_v34 = vmul.f32 %v4864_v27, %v4864_v27 }
 0x10f   :  { %v4876_v35 = vpop.f32.mrb[2].mxu1  ;;  %v3205_v30 = vld [vmem:[%s5637_s2 + $0xb0] sm:$0xff]  ;;  %v774_v33 = vld [vmem:[%s5637_s2 + $0x40] sm:$0xff] }
 0x110   :  { %v534_v36 = vrot.slane %v533_v31, 4  ;;  %v550_v37 = vadd.f32 %v549_v32, %v548_v29  ;;  %v540_v38 = vadd.f32 %v4876_v35, %v4864_v27  ;;  %v558_v39 = vmul.f32 %v4876_v35, %v4876_v35  ;;  %v3720_v40 = vpop.f32.mrb[3].mxu1 }
 0x111   :  { %v4252_v29 = vpack.c.bf16 %v773_v26, %v772_v24  ;;  %v777_v40 = vld [vmem:[%s5637_s2 + $0x58] sm:$0xff] }
 0x112   :  { %v535_v41 = vadd.f32 %v534_v36, %v533_v31  ;;  %v551_v42 = vrot.slane %v550_v37, 4  ;;  %v541_v43 = vrot.slane %v540_v38, 4  ;;  %v559_v44 = vadd.f32 %v558_v39, %v557_v34  ;;  %v3206_v31 = vld [vmem:[%s5637_s2 + $0xb8] sm:$0xff]  ;;  %v775_v34 = vld [vmem:[%s5637_s2 + $0x48] sm:$0xff]  ;;  %v3207_v36 = vld [vmem:[%s5637_s2 + $0xc0] sm:$0xff] }
 0x113   :  { %v4284_v32 = vpack.c.bf16 %v3206_v31, %v3205_v30  ;;  %v776_v39 = vld [vmem:[%s5637_s2 + $0x50] sm:$0xff] }
 0x114   :  { %v536_v45 = vrot.slane %v535_v41, 2  ;;  %v552_v46 = vadd.f32 %v551_v42, %v550_v37  ;;  %v542_v47 = vadd.f32 %v541_v43, %v540_v38  ;;  %v560_v48 = vrot.slane %v559_v44, 4  ;;  %v3208_v38 = vld [vmem:[%s5637_s2 + $0xc8] sm:$0xff]  ;;  %v3209_v43 = vld [vmem:[%s5637_s2 + $0xd0] sm:$0xff] }
 0x115   :  { %v4256_v37 = vpack.c.bf16 %v775_v34, %v774_v33  ;;  %v4260_v42 = vpack.c.bf16 %v777_v40, %v776_v39 }
 0x116   :  { %v537_v49 = vadd.f32 %v536_v45, %v535_v41  ;;  %v553_v50 = vrot.slane %v552_v46, 2  ;;  %v543_v51 = vrot.slane %v542_v47, 2  ;;  %v561_v52 = vadd.f32 %v560_v48, %v559_v44  ;;  %v3210_v44 = vld [vmem:[%s5637_s2 + $0xd8] sm:$0xff]  ;;  %v3211_v48 = vld [vmem:[%s5637_s2 + $0xe0] sm:$0xff] }
 0x117   :  { %v4288_v41 = vpack.c.bf16 %v3208_v38, %v3207_v36  ;;  %v4292_v45 = vpack.c.bf16 %v3210_v44, %v3209_v43  ;;  %v3221_v44 = vld [vmem:[%s5637_s2 + $0x130] sm:$0xff] }
 0x118   :  { %v538_v53 = vrot.slane %v537_v49, 1  ;;  %v554_v54 = vadd.f32 %v553_v50, %v552_v46  ;;  %v544_v55 = vadd.f32 %v543_v51, %v542_v47  ;;  %v562_v56 = vrot.slane %v561_v52, 2  ;;  %v778_v46 = vld [vmem:[%s5637_s2 + $0x60] sm:$0xff]  ;;  %v779_v47 = vld [vmem:[%s5637_s2 + $0x68] sm:$0xff] }
 0x119   :  { %v4264_v50 = vpack.c.bf16 %v779_v47, %v778_v46  ;;  %v3223_v47 = vld [vmem:[%s5637_s2 + $0x140] sm:$0xff] }
 0x11a   :  { %v545_v57 = vrot.slane %v544_v55, 1  ;;  %v563_v58 = vadd.f32 %v562_v56, %v561_v52  ;;  %v539_v59 = vadd.f32 %v538_v53, %v537_v49  ;;  %v555_v60 = vrot.slane %v554_v54, 1  ;;  %v3212_v49 = vld [vmem:[%s5637_s2 + $0xe8] sm:$0xff]  ;;  %v780_v52 = vld [vmem:[%s5637_s2 + $0x70] sm:$0xff]  ;;  %v781_v53 = vld [vmem:[%s5637_s2 + $0x78] sm:$0xff] }
 0x11b   :  { %v4296_v51 = vpack.c.bf16 %v3212_v49, %v3211_v48  ;;  %v4268_v56 = vpack.c.bf16 %v781_v53, %v780_v52  ;;  %v3224_v48 = vld [vmem:[%s5637_s2 + $0x148] sm:$0xff]  ;;  %v3227_v53 = vld [vmem:[%s5637_s2 + $0x160] sm:$0xff] }
 0x11c   :  { %v546_v61 = vadd.f32 %v545_v57, %v544_v55  ;;  %v556_v62 = vadd.f32 %v555_v60, %v554_v54  ;;  %v564_v63 = vrot.slane %v563_v58, 1  ;;  %v3213_v54 = vld [vmem:[%s5637_s2 + $0xf0] sm:$0xff]  ;;  %v3214_v55 = vld [vmem:[%s5637_s2 + $0xf8] sm:$0xff]  ;;  %v4320_v49 = vpack.c.bf16 %v3224_v48, %v3223_v47 }
 0x11d   :  { %v4300_v57 = vpack.c.bf16 %v3214_v55, %v3213_v54  ;;  %v3228_v54 = vld [vmem:[%s5637_s2 + $0x168] sm:$0xff] }
 0x11e   :  { %v547_v1 = vadd.f32 %v546_v61, %v539_v59  ;;  %v565_v3 = vadd.f32 %v564_v63, %v563_v58  ;;  %v3215_v58 = vld [vmem:[%s5637_s2 + $0x100] sm:$0xff]  ;;  %v3216_v59 = vld [vmem:[%s5637_s2 + $0x108] sm:$0xff]  ;;  %v4328_v55 = vpack.c.bf16 %v3228_v54, %v3227_v53 }
 0x11f   :  { %v4304_v60 = vpack.c.bf16 %v3216_v59, %v3215_v58  ;;  %v74_v59 = vld [vmem:[#allocation3 + $0x8] sm:$0x1] }
 0x120   :  { %3754 = vmatmul.mubr.f32.vlgmr.msra.gmra.mrb[4].mxu0 %v547_v1  ;;  %v566_v4 = vadd.f32 %v565_v3, %v556_v62 }
 0x121   :  { %4243 = vmatpush3.bf16.msra.mxu0 %v4240_v7 }
 0x122   :  { %3789 = vmatmul.mubr.f32.vlgmr.msra.gmra.mrb[4].mxu1 %v566_v4  ;;  %4245 = vmatprep.subr.bf16.mxu0 %v4244_v13 }
 0x123   :  { %4275 = vmatpush3.bf16.msra.mxu1 %v4272_v10  ;;  %v583_v10 = vld [vmem:[%s5605_s3] sm:$0x1] }
 0x124   :  { %4277 = vmatprep.subr.bf16.mxu1 %v4276_v16 }
 0x125   :  { %4247 = vmatpush3.bf16.msra.mxu0 %v4244_v13 }
 0x126   :  { %4249 = vmatprep.subr.bf16.mxu0 %v4248_v19 }
 0x127   :  { %4279 = vmatpush3.bf16.msra.mxu1 %v4276_v16 }
 0x128   :  { %4281 = vmatprep.subr.bf16.mxu1 %v4280_v23 }
 0x129   :  { %4251 = vmatpush3.bf16.msra.mxu0 %v4248_v19 }
 0x12a   :  { %4253 = vmatprep.subr.bf16.mxu0 %v4252_v29 }
 0x12b   :  { %4283 = vmatpush3.bf16.msra.mxu1 %v4280_v23 }
 0x12c   :  { %4285 = vmatprep.subr.bf16.mxu1 %v4284_v32 }
 0x12d   :  { %4255 = vmatpush3.bf16.msra.mxu0 %v4252_v29 }
 0x12e   :  { %4257 = vmatprep.subr.bf16.mxu0 %v4256_v37 }
 0x12f   :  { %4287 = vmatpush3.bf16.msra.mxu1 %v4284_v32 }
 0x130   :  { %4289 = vmatprep.subr.bf16.mxu1 %v4288_v41 }
 0x131   :  { %4259 = vmatpush3.bf16.msra.mxu0 %v4256_v37 }
 0x132   :  { %4261 = vmatprep.subr.bf16.mxu0 %v4260_v42 }
 0x133   :  { %4291 = vmatpush3.bf16.msra.mxu1 %v4288_v41  ;;  %v3219_v41 = vld [vmem:[%s5637_s2 + $0x120] sm:$0xff] }
 0x134   :  { %4293 = vmatprep.subr.bf16.mxu1 %v4292_v45 }
 0x135   :  { %4263 = vmatpush3.bf16.msra.mxu0 %v4260_v42  ;;  %v3220_v42 = vld [vmem:[%s5637_s2 + $0x128] sm:$0xff] }
 0x136   :  { %4265 = vmatprep.subr.bf16.mxu0 %v4264_v50  ;;  %v4312_v43 = vpack.c.bf16 %v3220_v42, %v3219_v41 }
 0x137   :  { %4295 = vmatpush3.bf16.msra.mxu1 %v4292_v45  ;;  %v3222_v45 = vld [vmem:[%s5637_s2 + $0x138] sm:$0xff] }
 0x138   :  { %4297 = vmatprep.subr.bf16.mxu1 %v4296_v51  ;;  %v4316_v46 = vpack.c.bf16 %v3222_v45, %v3221_v44 }
 0x139   :  { %4267 = vmatpush3.bf16.msra.mxu0 %v4264_v50  ;;  %v3225_v50 = vld [vmem:[%s5637_s2 + $0x150] sm:$0xff] }
 0x13a   :  { %4269 = vmatprep.subr.bf16.mxu0 %v4268_v56 }
 0x13b   :  { %4299 = vmatpush3.bf16.msra.mxu1 %v4296_v51  ;;  %v3226_v51 = vld [vmem:[%s5637_s2 + $0x158] sm:$0xff] }
 0x13c   :  { %4301 = vmatprep.subr.bf16.mxu1 %v4300_v57  ;;  %v4324_v52 = vpack.c.bf16 %v3226_v51, %v3225_v50 }
 0x13d   :  { %4271 = vmatpush3.bf16.msra.mxu0 %v4268_v56  ;;  %v3229_v56 = vld [vmem:[%s5637_s2 + $0x170] sm:$0xff] }
 0x13e   :  { %4305 = vmatprep.subr.bf16.mxu0 %v4304_v60 }
 0x13f   :  { %4303 = vmatpush3.bf16.msra.mxu1 %v4300_v57  ;;  %v3230_v57 = vld [vmem:[%s5637_s2 + $0x178] sm:$0xff] }
 0x140   :  { %3896 = vmatprep.subr.bf16.mxu1 %v4559_v0  ;;  %v4332_v58 = vpack.c.bf16 %v3230_v57, %v3229_v56 }
 0x1f3   :  { %v651_v61 = vpop.f32.mrb[4].mxu0 }
 0x1f4   :  { %v655_v62 = vmul.f32 0.001953125, %v651_v61  ;;  %v3755_v63 = vpop.f32.mrb[5].mxu0  ;;  %v82_v61 = vld [vmem:[#allocation3 + $0xc] sm:$0x1] }
 0x1f5   :  { %v722_v1 = vpop.f32.mrb[4].mxu1  ;;  %v83_v63 = vsel %vm78_vm9, 0, %v82_v61 }
 0x1f6   :  { %v727_v3 = vmul.f32 %v655_v62, %v655_v62  ;;  %v726_v4 = vmul.f32 0.001953125, %v722_v1  ;;  %v3790_v5 = vpop.f32.mrb[5].mxu1  ;;  %84 = vst [vmem:[#allocation3 + $0xc] sm:$0x1] %v83_v63  ;;  %v71_v1 = vld [vmem:[#allocation3] sm:$0x1] }
 0x1f8   :  { %v728_v6 = vsub.f32 %v726_v4, %v727_v3  ;;  %v79_v3 = vld [vmem:[#allocation3 + $0x4] sm:$0x1]  ;;  %v72_v4 = vsel %vm5046_vm7, 0, %v71_v1 }
 0x1f9   :  { %v80_v5 = vsel %vm78_vm9, 0, %v79_v3  ;;  %73 = vst [vmem:[#allocation3] sm:$0x1] %v72_v4  ;;  %v4501_v4 = vld [vmem:[%s5607_s8] sm:$0xff]  }
 0x1fa   :  { %v729_v7 = vadd.f32 1e-05, %v728_v6  ;;  %81 = vst [vmem:[#allocation3 + $0x4] sm:$0x1] %v80_v5  ;;  %v4497_v6 = vld [vmem:[%s5607_s8 + $0x20] sm:$0xff]  }
 0x1fc   :  { %4549 = vrsqrt.f32 %v729_v7  ;;  %v4498_v7 = vld [vmem:[%s5607_s8 + $0x28] sm:$0xff]  }
 0x206   :  { %v4550_v12 = vpop.eup %4549 }
 0x207   :  { %v731_v13 = vmul.f32 %v4550_v12, %v583_v10 }
 0x209   :  { %v732_v15 = vmul.f32 %v731_v13, %v655_v62  ;;  %v738_v16 = vrot.slane %v731_v13, %v4988_v11  ;;  %v75_v62 = vsel %vm5046_vm7, 0, %v74_v59 }
 0x20a   :  { %76 = vst [vmem:[#allocation3 + $0x8] sm:$0x1] %v75_v62 }
 0x20b   :  { %v733_v17 = vsub.f32 %v584_v14, %v732_v15  ;;  %v740_v18 = vmul.f32 %v738_v16, %v4862_v25  ;;  %v752_v19 = vmul.f32 %v738_v16, %v4864_v27  ;;  %v741_v20 = vmul.f32 %v738_v16, %v4866_v28  ;;  %v3217_v27 = vld [vmem:[%s5637_s2 + $0x110] sm:$0xff]  ;;  %v3218_v28 = vld [vmem:[%s5637_s2 + $0x118] sm:$0xff] }
 0x20c   :  { %v753_v22 = vmul.f32 %v738_v16, %v4876_v35  ;;  %v4308_v40 = vpack.c.bf16 %v3218_v28, %v3217_v27  ;;  %v1081_v28 = vld [vmem:[#allocation3] sm:$0xf] }
 0x20d   :  { %v746_v23 = vrot.slane %v733_v17, %v4988_v11 }
 0x20f   :  { %v748_v24 = vadd.f32 %v746_v23, %v740_v18  ;;  %v754_v26 = vadd.f32 %v752_v19, %v746_v23  ;;  %v749_v29 = vadd.f32 %v746_v23, %v741_v20  ;;  %v755_v30 = vadd.f32 %v753_v22, %v746_v23 }
 0x211   :  { %v750_v31 = vmax.f32 %v748_v24, 0.0  ;;  %v756_v32 = vmax.f32 %v754_v26, 0.0  ;;  %v751_v33 = vmax.f32 %v749_v29, 0.0  ;;  %v757_v34 = vmax.f32 %v755_v30, 0.0 }
 0x213   :  { %758 = vst [vmem:[#allocation2 + $0x1] sm:$0xff] %v756_v32  ;;  %v760_v36 = vmax.f32 %v750_v31, %v756_v32  ;;  %759 = vst [vmem:[#allocation2 + $0x11] sm:$0xff] %v757_v34  ;;  %v761_v25 = vmax.f32 %v751_v33, %v757_v34  ;;  %v1087_v32 = vld [vmem:[#allocation3 + $0x8] sm:$0xf]  ;;  %v1090_v33 = vld [vmem:[#allocation3 + $0xc] sm:$0x1] }
 0x21a   :  { %v762_v35 = vld [vmem:[#allocation2] sm:$0xff]  ;;  %v763_v37 = vld [vmem:[#allocation2 + $0x10] sm:$0xff] }
 0x21b   :  { %v764_v38 = vmax.f32 %v760_v36, %v762_v35  ;;  %v765_v39 = vmax.f32 %v761_v25, %v763_v37  ;;  %v1084_v35 = vld [vmem:[#allocation3 + $0x4] sm:$0x1] }
 0x21d   :  { %3823 = vmatprep.mubr.f32.mxu0 %v764_v38  ;;  %3858 = vmatprep.mubr.f32.mxu1 %v764_v38 }
 0x21e   :  { %3824 = vmatmul.mubr.f32.vlgmr.msra.gmra.mrb[6].mxu0 %v765_v39  ;;  %3859 = vmatmul.mubr.f32.vlgmr.msra.gmra.mrb[6].mxu1 %v765_v39 }
 0x21f   :  { %4307 = vmatpush3.bf16.msra.mxu0 %v4304_v60  ;;  %3893 = vmatprep.mubr.f32.mxu0 %v764_v38 }
 0x220   :  { %4309 = vmatprep.subr.bf16.mxu0 %v4308_v40  ;;  %3904 = vmatprep.mubr.msk.bf16.mxu1 %vm4560_vm0, %v4559_v0 }
 0x221   :  { %3897 = vmatpush3.bf16.msra.mxu1 %v4497_v6  ;;  %v4502_v6 = vld [vmem:[%s5607_s8 + $0x8] sm:$0xff]  }
 0x222   :  { %3898 = vmatprep.subr.bf16.mxu1 %v4559_v0 }
 0x223   :  { %4311 = vmatpush3.bf16.msra.mxu0 %v4308_v40 }
 0x224   :  { %4313 = vmatprep.subr.bf16.mxu0 %v4312_v43 }
 0x225   :  { %3899 = vmatpush3.bf16.msra.mxu1 %v4498_v7  ;;  %v4503_v7 = vld [vmem:[%s5607_s8 + $0x10] sm:$0xff]  }
 0x226   :  { %3900 = vmatprep.subr.bf16.mxu1 %v4559_v0 }
 0x227   :  { %4315 = vmatpush3.bf16.msra.mxu0 %v4312_v43 }
 0x228   :  { %4317 = vmatprep.subr.bf16.mxu0 %v4316_v46 }
 0x229   :  { %3901 = vmatpush3.bf16.msra.mxu1 %v4499_v8  ;;  %v4504_v8 = vld [vmem:[%s5607_s8 + $0x18] sm:$0xff]  }
 0x22a   :  { %3902 = vmatprep.subr.bf16.mxu1 %v4559_v0 }
 0x22b   :  { %4319 = vmatpush3.bf16.msra.mxu0 %v4316_v46 }
 0x22c   :  { %4321 = vmatprep.subr.bf16.mxu0 %v4320_v49 }
 0x22d   :  { %3903 = vmatpush3.bf16.msra.mxu1 %v4500_v9  ;;  %v4506_v9 = vld [vmem:[%s5607_s8 + $0x40] sm:$0xff]  }
 0x22e   :  { %3908 = vmatprep.subr.bf16.mxu1 %v4559_v0 }
 0x22f   :  { %4323 = vmatpush3.bf16.msra.mxu0 %v4320_v49 }
 0x230   :  { %4325 = vmatprep.subr.bf16.mxu0 %v4324_v52 }
 0x233   :  { %4327 = vmatpush3.bf16.msra.mxu0 %v4324_v52 }
 0x234   :  { %4329 = vmatprep.subr.bf16.mxu0 %v4328_v55 }
 0x237   :  { %4331 = vmatpush3.bf16.msra.mxu0 %v4328_v55 }
 0x238   :  { %4333 = vmatprep.subr.bf16.mxu0 %v4332_v58 }
 0x23b   :  { %4335 = vmatpush3.bf16.msra.mxu0 %v4332_v58 }
 0x23c   :  { %4336 = vmatprep.subr.bf16.mxu0 %v4561_v2 }
 0x23e   :  { %3894 = vmatmul.mubr.f32.vlgmr.msra.gmra.mrb[8].mxu0 %v765_v39 }
 0x23f   :  { %3948 = vmatprep.mubr.msk.f32.mxu0 %vm4560_vm0, %v4559_v0 }
 0x2f1   :  { %v3825_v10 = vpop.f32.mrb[6].mxu0  ;;  %v3860_v12 = vpop.f32.mrb[6].mxu1 }
 0x2f2   :  { %v950_v13 = vmax.f32 %v3825_v10, %v3860_v12  ;;  %v848_v14 = vpop.f32.mrb[7].mxu0  ;;  %v940_v15 = vpop.f32.mrb[7].mxu1  ;;  %v4507_v12 = vld [vmem:[%s5607_s8 + $0x48] sm:$0xff]  }
 0x2f3   :  { %v949_v16 = vmax.f32 %v848_v14, %v940_v15  ;;  %v4508_v15 = vld [vmem:[%s5607_s8 + $0x50] sm:$0xff]  }
 0x311   :  { %v3895_v17 = vpop.f32.mrb[8].mxu0 }
 0x312   :  { %v5071_v18 = vmax.f32 %v950_v13, %v3895_v17  ;;  %v1034_v19 = vpop.f32.mrb[9].mxu0 }
 0x313   :  { %v5073_v20 = vmax.f32 %v949_v16, %v1034_v19 }
 0x314   :  { %v3392_v22 = vpack.c.bf16 %v5071_v18, %v5071_v18 }
 0x315   :  { %v3391_v23 = vpack.c.bf16 %v5073_v20, %v5073_v20 }
 0x316   :  { %v1068_v24 = vshrl.u32 %v3392_v22, 16  ;;  %v1071_v30 = vshll.u32 %v3392_v22, 16 }
 0x317   :  { %v1060_v26 = vshrl.u32 %v3391_v23, 16  ;;  %v1063_v36 = vshll.u32 %v3391_v23, 16 }
 0x318   :  { %v1070_v29 = vrot.slane %v1068_v24, 7  ;;  %v4509_v24 = vld [vmem:[%s5607_s8 + $0x58] sm:$0xff]  }
 0x319   :  { %v1062_v34 = vrot.slane %v1060_v26, 7 }
 0x31a   :  { %v1073_v25 = vor.u32 %v1071_v30, %v1070_v29  ;;  %v1074_v27 = vrot.slane %v1070_v29, 4 }
 0x31b   :  { %v1065_v37 = vor.u32 %v1063_v36, %v1062_v34  ;;  %v1066_v38 = vrot.slane %v1062_v34, 4  ;;  %v1047_v36 = vld [vmem:[%s5608_s7 + $0x10] sm:$0xff] }
 0x31c   :  { %v1088_v39 = vsel %vm5080_vm11, %v1073_v25, %v1087_v32  ;;  %v1091_v40 = vsel %vm5046_vm7, %v1074_v27, %v1090_v33  ;;  %v1045_v32 = vld [vmem:[%s5608_s7] sm:$0xff]  ;;  %v1046_v33 = vld [vmem:[%s5608_s7 + $0x8] sm:$0xff]  ;;  %v1048_v25 = vld [vmem:[%s5608_s7 + $0x18] sm:$0xff] }
 0x31d   :  { %1089 = vst [vmem:[#allocation3 + $0x8] sm:$0xf] %v1088_v39  ;;  %1092 = vst [vmem:[#allocation3 + $0xc] sm:$0x1] %v1091_v40  ;;  %v1082_v41 = vsel %vm5080_vm11, %v1065_v37, %v1081_v28  ;;  %v1085_v42 = vsel %vm5046_vm7, %v1066_v38, %v1084_v35  ;;  %v5156_v34 = vpack.c.bf16 %v1046_v33, %v1045_v32  ;;  %v1049_v28 = vld [vmem:[%s5608_s7 + $0x20] sm:$0xff]  ;;  %v1050_v35 = vld [vmem:[%s5608_s7 + $0x28] sm:$0xff] }
 0x31e   :  { %1083 = vst [vmem:[#allocation3] sm:$0xf] %v1082_v41  ;;  %1086 = vst [vmem:[#allocation3 + $0x4] sm:$0x1] %v1085_v42  ;;  %v5166_v27 = vpack.c.bf16 %v1048_v25, %v1047_v36  ;;  %v5176_v37 = vpack.c.bf16 %v1050_v35, %v1049_v28  ;;  %v1051_v38 = vld [vmem:[%s5608_s7 + $0x30] sm:$0xff]  ;;  %v1052_v39 = vld [vmem:[%s5608_s7 + $0x38] sm:$0xff] }
 0x31f   :  { %4338 = vmatpush3.bf16.msra.mxu0 %v5156_v34  ;;  %v5186_v40 = vpack.c.bf16 %v1052_v39, %v1051_v38 }
 0x320   :  { %4339 = vmatprep.subr.bf16.mxu0 %v4561_v2 }
 0x323   :  { %4341 = vmatpush3.bf16.msra.mxu0 %v5166_v27 }
 0x324   :  { %v1094_v43 = vld [vmem:[#allocation3 + $0x8] sm:$0xf]  ;;  %v1104_v44 = vld [vmem:[#allocation3 + $0xc] sm:$0x1]  ;;  %4342 = vmatprep.subr.bf16.mxu0 %v4561_v2 }
 0x325   :  { %v5092_v45 = vld [vmem:[#allocation3] sm:$0xf]  ;;  %v1103_v46 = vld [vmem:[#allocation3 + $0x4] sm:$0x1]  ;;  %v1129_v47 = vshrl.u32 %v1094_v43, 16  ;;  %v1132_v48 = vshll.u32 %v1094_v43, 16 }
 0x326   :  { %v1115_v49 = vshrl.u32 %v5092_v45, 16  ;;  %v1118_v50 = vshll.u32 %v5092_v45, 16  ;;  %v1138_v53 = vshll.u32 %v1104_v44, 16  ;;  %v1124_v56 = vshll.u32 %v1103_v46, 16  ;;  %v1286_v13 = vld [vmem:[#allocation3] sm:$0xe] }
 0x327   :  { %v1131_v51 = vrot.slane %v1129_v47, 4  ;;  %v1134_v52 = vrot.slane %v1132_v48, 5  ;;  %v3247_v10 = vcombine.low %v5092_v45, %v1094_v43  ;;  %v1287_v14 = vld [vmem:[#allocation3 + $0x8] sm:$0xe]  ;;  %v3261_v16 = vrot.slane %v1286_v13, 9  ;;  %4344 = vmatpush3.bf16.msra.mxu0 %v5176_v37 }
 0x328   :  { %v1117_v54 = vrot.slane %v1115_v49, 4  ;;  %v1120_v55 = vrot.slane %v1118_v50, 5  ;;  %v1140_v61 = vrot.slane %v1138_v53, 5  ;;  %v1126_v63 = vrot.slane %v1124_v56, 5  ;;  %4345 = vmatprep.subr.bf16.mxu0 %v4561_v2 }
 0x329   :  { %v1135_v57 = vor.u32 %v1134_v52, %v1131_v51  ;;  %v1306_v17 = vrot.slane %v1103_v46, 5  ;;  %v3262_v19 = vrot.slane %v1287_v14, 9  ;;  %v1310_v22 = vrot.slane %v1104_v44, 5 }
 0x32a   :  { %v1121_v58 = vor.u32 %v1120_v55, %v1117_v54 }
 0x32b   :  { %v1136_v59 = vrot.slane %v1135_v57, 4  ;;  %v1307_v26 = vsel %vm5134_vm14, %v3261_v16, %v1306_v17  ;;  %v1311_v29 = vsel %vm5134_vm14, %v3262_v19, %v1310_v22  ;;  %4347 = vmatpush3.bf16.msra.mxu0 %v5186_v40  ;;  %v1405_v22 = vld [vmem:[%s5610_s9] sm:$0x1] }
 0x32c   :  { %v1122_v62 = vrot.slane %v1121_v58, 4  ;;  %v3263_v30 = vcombine.low %v1307_v26, %v1311_v29  ;;  %4348 = vmatprep.subr.bf16.mxu0 %v4561_v2  ;;  %v1406_v29 = vld [vmem:[%s5611_s10] sm:$0x1] }
 0x32d   :  { %v1141_v1 = vsel %vm4706_vm3, %v1136_v59, %v1140_v61 }
 0x32e   :  { %v1127_v3 = vsel %vm4706_vm3, %v1122_v62, %v1126_v63 }
 0x32f   :  { %v3241_v5 = vcombine.low %v1127_v3, %v1141_v1 }
 0x331   :  { %3905 = vmatmul.mubr.msk.bf16.vlgmr.msra.gmra.mrb[8].mxu1 %vm135_vm4, %v3241_v5  ;;  %v4510_v5 = vld [vmem:[%s5609_s11 + $0x20] sm:$0xff]  }
 0x332   :  { %3909 = vmatpush3.bf16.msra.mxu1 %v4501_v4  ;;  %3916 = vmatprep.mubr.msk.bf16.mxu1 %vm4560_vm0, %v4559_v0 }
 0x333   :  { %3910 = vmatprep.subr.bf16.mxu1 %v4559_v0 }
 0x336   :  { %3911 = vmatpush3.bf16.msra.mxu1 %v4502_v6  ;;  %v4511_v6 = vld [vmem:[%s5609_s11 + $0x28] sm:$0xff]  }
 0x337   :  { %3912 = vmatprep.subr.bf16.mxu1 %v4559_v0 }
 0x33a   :  { %3913 = vmatpush3.bf16.msra.mxu1 %v4503_v7  ;;  %v4512_v7 = vld [vmem:[%s5609_s11 + $0x30] sm:$0xff]  }
 0x33b   :  { %3914 = vmatprep.subr.bf16.mxu1 %v4559_v0 }
 0x33e   :  { %3915 = vmatpush3.bf16.msra.mxu1 %v4504_v8  ;;  %v4513_v8 = vld [vmem:[%s5609_s11 + $0x38] sm:$0xff]  }
 0x33f   :  { %3920 = vmatprep.subr.bf16.mxu1 %v4559_v0 }
 0x341   :  { %3917 = vmatmul.mubr.msk.bf16.vlgmr.msra.gmra.mrb[8].mxu1 %vm135_vm4, %v3247_v10 }
 0x342   :  { %3921 = vmatpush3.bf16.msra.mxu1 %v4506_v9  ;;  %3928 = vmatprep.mubr.msk.bf16.mxu1 %vm4560_vm0, %v4559_v0 }
 0x343   :  { %3922 = vmatprep.subr.bf16.mxu1 %v4559_v0 }
 0x346   :  { %3923 = vmatpush3.bf16.msra.mxu1 %v4507_v12 }
 0x347   :  { %3924 = vmatprep.subr.bf16.mxu1 %v4559_v0 }
 0x34a   :  { %3925 = vmatpush3.bf16.msra.mxu1 %v4508_v15 }
 0x34b   :  { %3926 = vmatprep.subr.bf16.mxu1 %v4559_v0 }
 0x34e   :  { %3927 = vmatpush3.bf16.msra.mxu1 %v4509_v24 }
 0x34f   :  { %3970 = vmatprep.subr.bf16.mxu1 %v4559_v0 }
 0x351   :  { %3929 = vmatmul.mubr.msk.bf16.vlgmr.msra.gmra.mrb[8].mxu1 %vm135_vm4, %v3263_v30 }
 0x352   :  { %3978 = vmatprep.mubr.msk.bf16.mxu1 %vm4560_vm0, %v4559_v0  ;;  %3971 = vmatpush3.bf16.msra.mxu1 %v4510_v5 }
 0x353   :  { %3972 = vmatprep.subr.bf16.mxu1 %v4559_v0 }
 0x356   :  { %3973 = vmatpush3.bf16.msra.mxu1 %v4511_v6 }
 0x357   :  { %3974 = vmatprep.subr.bf16.mxu1 %v4559_v0 }
 0x35a   :  { %3975 = vmatpush3.bf16.msra.mxu1 %v4512_v7 }
 0x35b   :  { %3976 = vmatprep.subr.bf16.mxu1 %v4559_v0 }
 0x35e   :  { %3977 = vmatpush3.bf16.msra.mxu1 %v4513_v8 }
 0x35f   :  { %3982 = vmatprep.subr.bf16.mxu1 %v4559_v0 }
 0x424   :  { %v5190_v41 = vpop.f32.mrb[8].mxu1 }
 0x425   :  { %v1394_v42 = vmul.f32 %v5190_v41, %v5190_v41  ;;  %v3930_v43 = vpop.f32.mrb[9].mxu1  ;;  %v1385_v46 = vsel %vm135_vm4, %v5190_v41, 0.0 }
 0x426   :  { %v5194_v44 = vpop.f32.mrb[10].mxu1 }
 0x427   :  { %v1386_v47 = vsel %vm135_vm4, %v5194_v44, 0.0  ;;  %v1395_v48 = vmul.f32 %v5194_v44, %v5194_v44  ;;  %v3931_v49 = vpop.f32.mrb[11].mxu1  ;;  %v1396_v51 = vsel %vm135_vm4, %v1394_v42, 0.0 }
 0x428   :  { %v1387_v50 = vadd.f32 %v1386_v47, %v1385_v46 }
 0x429   :  { %v1397_v52 = vsel %vm135_vm4, %v1395_v48, 0.0 }
 0x42a   :  { %v1388_v53 = vrot.slane %v1387_v50, 4  ;;  %v1398_v54 = vadd.f32 %v1397_v52, %v1396_v51 }
 0x42c   :  { %v1389_v55 = vadd.f32 %v1388_v53, %v1387_v50  ;;  %v1399_v58 = vrot.slane %v1398_v54, 4 }
 0x42e   :  { %v1390_v56 = vrot.slane %v1389_v55, 2  ;;  %v1400_v62 = vadd.f32 %v1399_v58, %v1398_v54 }
 0x430   :  { %v1391_v57 = vadd.f32 %v1390_v56, %v1389_v55  ;;  %v1401_v63 = vrot.slane %v1400_v62, 2  ;;  %v1608_v56 = vld [vmem:[#allocation3 + $0x4] sm:$0x1] }
 0x432   :  { %v1392_v59 = vrot.slane %v1391_v57, 1  ;;  %v1402_v1 = vadd.f32 %v1401_v63, %v1400_v62 }
 0x434   :  { %v1393_v61 = vadd.f32 %v1392_v59, %v1391_v57  ;;  %v1403_v3 = vrot.slane %v1402_v1, 1  ;;  %v1614_v57 = vld [vmem:[#allocation3 + $0xc] sm:$0x1] }
 0x436   :  { %3949 = vmatmul.mubr.msk.f32.vlgmr.msra.gmra.mrb[10].mxu0 %vm135_vm4, %v1393_v61  ;;  %v1404_v4 = vadd.f32 %v1403_v3, %v1402_v1 }
 0x437   :  { %4350 = vmatpush3.bf16.msra.mxu0 %v5156_v34  ;;  %3967 = vmatprep.mubr.msk.f32.mxu0 %vm4560_vm0, %v4559_v0 }
 0x438   :  { %4351 = vmatprep.subr.bf16.mxu0 %v4561_v2 }
 0x43b   :  { %4353 = vmatpush3.bf16.msra.mxu0 %v5166_v27 }
 0x43c   :  { %4354 = vmatprep.subr.bf16.mxu0 %v4561_v2 }
 0x43f   :  { %4356 = vmatpush3.bf16.msra.mxu0 %v5176_v37 }
 0x440   :  { %4357 = vmatprep.subr.bf16.mxu0 %v4561_v2 }
 0x443   :  { %4359 = vmatpush3.bf16.msra.mxu0 %v5186_v40 }
 0x444   :  { %4360 = vmatprep.subr.bf16.mxu0 %v4561_v2 }
 0x446   :  { %3968 = vmatmul.mubr.msk.f32.vlgmr.msra.gmra.mrb[12].mxu0 %vm135_vm4, %v1404_v4 }
 0x447   :  { %4362 = vmatpush3.bf16.msra.mxu0 %v5156_v34  ;;  %4022 = vmatprep.mubr.msk.f32.mxu0 %vm4560_vm0, %v4559_v0 }
 0x448   :  { %4363 = vmatprep.subr.bf16.mxu0 %v4561_v2 }
 0x44b   :  { %4365 = vmatpush3.bf16.msra.mxu0 %v5166_v27 }
 0x44c   :  { %4366 = vmatprep.subr.bf16.mxu0 %v4561_v2 }
 0x44f   :  { %4368 = vmatpush3.bf16.msra.mxu0 %v5176_v37 }
 0x450   :  { %4369 = vmatprep.subr.bf16.mxu0 %v4561_v2 }
 0x453   :  { %4371 = vmatpush3.bf16.msra.mxu0 %v5186_v40 }
 0x454   :  { %4372 = vmatprep.subr.bf16.mxu0 %v4561_v2 }
 0x509   :  { %v1476_v9 = vpop.f32.mrb[10].mxu0 }
 0x50a   :  { %v3950_v10 = vpop.f32.mrb[11].mxu0  ;;  %v1480_v12 = vmul.f32 0.0078125, %v1476_v9 }
 0x50c   :  { %v1555_v14 = vmul.f32 %v1480_v12, %v1480_v12 }
 0x519   :  { %v1550_v13 = vpop.f32.mrb[12].mxu0 }
 0x51a   :  { %v1554_v15 = vmul.f32 0.0078125, %v1550_v13  ;;  %v3969_v16 = vpop.f32.mrb[13].mxu0 }
 0x51c   :  { %v1556_v17 = vsub.f32 %v1554_v15, %v1555_v14 }
 0x51e   :  { %v1557_v19 = vadd.f32 1e-05, %v1556_v17 }
 0x520   :  { %4551 = vrsqrt.f32 %v1557_v19 }
 0x52a   :  { %v4552_v24 = vpop.eup %4551 }
 0x52b   :  { %v1559_v26 = vmul.f32 %v4552_v24, %v1405_v22 }
 0x52d   :  { %v1560_v30 = vmul.f32 %v1559_v26, %v1480_v12  ;;  %v1566_v32 = vrot.slane %v1559_v26, %v4988_v11 }
 0x52f   :  { %v1561_v33 = vsub.f32 %v1406_v29, %v1560_v30  ;;  %v1568_v36 = vmul.f32 %v1566_v32, %v5190_v41  ;;  %v1569_v25 = vmul.f32 %v1566_v32, %v5194_v44  ;;  %v1611_v44 = vld [vmem:[#allocation3 + $0x8] sm:$0xf]  ;;  %v4514_v30 = vld [vmem:[%s5609_s11] sm:$0xff]  }
 0x531   :  { %v1574_v28 = vrot.slane %v1561_v33, %v4988_v11  ;;  %v4515_v33 = vld [vmem:[%s5609_s11 + $0x8] sm:$0xff]  }
 0x533   :  { %v1576_v35 = vadd.f32 %v1574_v28, %v1568_v36  ;;  %v1577_v38 = vadd.f32 %v1574_v28, %v1569_v25  ;;  %v4516_v36 = vld [vmem:[%s5609_s11 + $0x10] sm:$0xff]   ;;  %v4517_v25 = vld [vmem:[%s5609_s11 + $0x18] sm:$0xff]   ;;  %v4519_v28 = vld [vmem:[%s5609_s11 + $0x40] sm:$0xff]  }
 0x535   :  { %v1578_v39 = vmax.f32 %v1576_v35, 0.0  ;;  %v1579_v42 = vmax.f32 %v1577_v38, 0.0  ;;  %v4520_v38 = vld [vmem:[%s5609_s11 + $0x48] sm:$0xff]  }
 0x537   :  { %v3393_v43 = vpack.c.bf16 %v1578_v39, %v1578_v39  ;;  %v3394_v46 = vpack.c.bf16 %v1579_v42, %v1579_v42 }
 0x539   :  { %v1587_v47 = vshrl.u32 %v3393_v43, 16  ;;  %v1595_v48 = vshrl.u32 %v3394_v46, 16  ;;  %v1590_v50 = vshll.u32 %v3393_v43, 16  ;;  %v1598_v52 = vshll.u32 %v3394_v46, 16  ;;  %v4521_v43 = vld [vmem:[%s5609_s11 + $0x50] sm:$0xff]  }
 0x53b   :  { %v1589_v49 = vrot.slane %v1587_v47, 7  ;;  %v1597_v51 = vrot.slane %v1595_v48, 7 }
 0x53d   :  { %v1592_v53 = vor.u32 %v1590_v50, %v1589_v49  ;;  %v1593_v54 = vrot.slane %v1589_v49, 4  ;;  %v1600_v55 = vor.u32 %v1598_v52, %v1597_v51  ;;  %v1601_v41 = vrot.slane %v1597_v51, 4  ;;  %v4522_v50 = vld [vmem:[%s5609_s11 + $0x58] sm:$0xff]  }
 0x53f   :  { %v1606_v58 = vsel %vm5080_vm11, %v1592_v53, %v5092_v45  ;;  %v1609_v59 = vsel %vm5046_vm7, %v1593_v54, %v1608_v56  ;;  %v1612_v61 = vsel %vm5080_vm11, %v1600_v55, %v1611_v44  ;;  %v1615_v62 = vsel %vm5046_vm7, %v1601_v41, %v1614_v57 }
 0x540   :  { %1607 = vst [vmem:[#allocation3] sm:$0xf] %v1606_v58  ;;  %1610 = vst [vmem:[#allocation3 + $0x4] sm:$0x1] %v1609_v59 }
 0x541   :  { %1613 = vst [vmem:[#allocation3 + $0x8] sm:$0xf] %v1612_v61  ;;  %1616 = vst [vmem:[#allocation3 + $0xc] sm:$0x1] %v1615_v62 }
 0x547   :  { %v5261_v63 = vld [vmem:[#allocation3] sm:$0xf]  ;;  %v1627_v3 = vld [vmem:[#allocation3 + $0x4] sm:$0x1] }
 0x548   :  { %v1618_v1 = vld [vmem:[#allocation3 + $0x8] sm:$0xf]  ;;  %v1628_v4 = vld [vmem:[#allocation3 + $0xc] sm:$0x1]  ;;  %v1639_v45 = vshrl.u32 %v5261_v63, 16  ;;  %v1642_v5 = vshll.u32 %v5261_v63, 16 }
 0x549   :  { %v1653_v6 = vshrl.u32 %v1618_v1, 16  ;;  %v1656_v7 = vshll.u32 %v1618_v1, 16  ;;  %v1648_v10 = vshll.u32 %v1627_v3, 16  ;;  %v1662_v14 = vshll.u32 %v1628_v4, 16  ;;  %v1810_v39 = vld [vmem:[#allocation3] sm:$0xe] }
 0x54a   :  { %v1641_v8 = vrot.slane %v1639_v45, 4  ;;  %v1644_v9 = vrot.slane %v1642_v5, 5  ;;  %v3287_v35 = vcombine.low %v5261_v63, %v1618_v1  ;;  %v1811_v42 = vld [vmem:[#allocation3 + $0x8] sm:$0xe]  ;;  %v3301_v46 = vrot.slane %v1810_v39, 9 }
 0x54b   :  { %v1655_v12 = vrot.slane %v1653_v6, 4  ;;  %v1658_v13 = vrot.slane %v1656_v7, 5  ;;  %v1650_v19 = vrot.slane %v1648_v10, 5  ;;  %v1664_v24 = vrot.slane %v1662_v14, 5 }
 0x54c   :  { %v1645_v15 = vor.u32 %v1644_v9, %v1641_v8  ;;  %v1827_v47 = vrot.slane %v1627_v3, 5  ;;  %v3302_v48 = vrot.slane %v1811_v42, 9  ;;  %v1831_v49 = vrot.slane %v1628_v4, 5  ;;  %v1927_v42 = vld [vmem:[%s5614_s13] sm:$0x1] }
 0x54d   :  { %v1659_v16 = vor.u32 %v1658_v13, %v1655_v12 }
 0x54e   :  { %v1646_v17 = vrot.slane %v1645_v15, 4  ;;  %v1828_v51 = vsel %vm5134_vm14, %v3301_v46, %v1827_v47  ;;  %v1832_v52 = vsel %vm5134_vm14, %v3302_v48, %v1831_v49 }
 0x54f   :  { %v1660_v22 = vrot.slane %v1659_v16, 4  ;;  %v3303_v53 = vcombine.low %v1828_v51, %v1832_v52  ;;  %v4523_v16 = vld [vmem:[%s5612_s14 + $0x20] sm:$0xff]  }
 0x550   :  { %v1651_v26 = vsel %vm4706_vm3, %v1646_v17, %v1650_v19  ;;  %v4524_v17 = vld [vmem:[%s5612_s14 + $0x28] sm:$0xff]   ;;  %v4525_v19 = vld [vmem:[%s5612_s14 + $0x30] sm:$0xff]  }
 0x551   :  { %v1665_v29 = vsel %vm4706_vm3, %v1660_v22, %v1664_v24  ;;  %v4526_v22 = vld [vmem:[%s5612_s14 + $0x38] sm:$0xff]  }
 0x552   :  { %v3281_v32 = vcombine.low %v1651_v26, %v1665_v29 }
 0x554   :  { %3979 = vmatmul.mubr.msk.bf16.vlgmr.msra.gmra.mrb[12].mxu1 %vm135_vm4, %v3281_v32 }
 0x555   :  { %3983 = vmatpush3.bf16.msra.mxu1 %v4514_v30  ;;  %3990 = vmatprep.mubr.msk.bf16.mxu1 %vm4560_vm0, %v4559_v0 }
 0x556   :  { %3984 = vmatprep.subr.bf16.mxu1 %v4559_v0 }
 0x559   :  { %3985 = vmatpush3.bf16.msra.mxu1 %v4515_v33 }
 0x55a   :  { %3986 = vmatprep.subr.bf16.mxu1 %v4559_v0 }
 0x55d   :  { %3987 = vmatpush3.bf16.msra.mxu1 %v4516_v36 }
 0x55e   :  { %3988 = vmatprep.subr.bf16.mxu1 %v4559_v0 }
 0x561   :  { %3989 = vmatpush3.bf16.msra.mxu1 %v4517_v25 }
 0x562   :  { %3994 = vmatprep.subr.bf16.mxu1 %v4559_v0 }
 0x564   :  { %3991 = vmatmul.mubr.msk.bf16.vlgmr.msra.gmra.mrb[12].mxu1 %vm135_vm4, %v3287_v35  ;;  %v1926_v35 = vld [vmem:[%s5613_s12] sm:$0x1] }
 0x565   :  { %3995 = vmatpush3.bf16.msra.mxu1 %v4519_v28  ;;  %4002 = vmatprep.mubr.msk.bf16.mxu1 %vm4560_vm0, %v4559_v0 }
 0x566   :  { %3996 = vmatprep.subr.bf16.mxu1 %v4559_v0 }
 0x569   :  { %3997 = vmatpush3.bf16.msra.mxu1 %v4520_v38 }
 0x56a   :  { %3998 = vmatprep.subr.bf16.mxu1 %v4559_v0 }
 0x56d   :  { %3999 = vmatpush3.bf16.msra.mxu1 %v4521_v43 }
 0x56e   :  { %4000 = vmatprep.subr.bf16.mxu1 %v4559_v0 }
 0x571   :  { %4001 = vmatpush3.bf16.msra.mxu1 %v4522_v50 }
 0x572   :  { %4384 = vmatprep.subr.bf16.mxu1 %v4561_v2 }
 0x574   :  { %4003 = vmatmul.mubr.msk.bf16.vlgmr.msra.gmra.mrb[12].mxu1 %vm135_vm4, %v3303_v53 }
 0x575   :  { %4386 = vmatpush3.bf16.msra.mxu1 %v5156_v34  ;;  %4096 = vmatprep.mubr.msk.f32.mxu1 %vm4560_vm0, %v4559_v0 }
 0x576   :  { %4387 = vmatprep.subr.bf16.mxu1 %v4561_v2 }
 0x579   :  { %4389 = vmatpush3.bf16.msra.mxu1 %v5166_v27 }
 0x57a   :  { %4390 = vmatprep.subr.bf16.mxu1 %v4561_v2 }
 0x57d   :  { %4392 = vmatpush3.bf16.msra.mxu1 %v5176_v37 }
 0x57e   :  { %4393 = vmatprep.subr.bf16.mxu1 %v4561_v2 }
 0x581   :  { %4395 = vmatpush3.bf16.msra.mxu1 %v5186_v40 }
 0x582   :  { %4396 = vmatprep.subr.bf16.mxu1 %v4561_v2 }
 0x647   :  { %v5323_v54 = vpop.f32.mrb[12].mxu1 }
 0x648   :  { %v1915_v55 = vmul.f32 %v5323_v54, %v5323_v54  ;;  %v4004_v41 = vpop.f32.mrb[13].mxu1  ;;  %v1906_v44 = vsel %vm135_vm4, %v5323_v54, 0.0 }
 0x649   :  { %v5327_v56 = vpop.f32.mrb[14].mxu1 }
 0x64a   :  { %v1907_v57 = vsel %vm135_vm4, %v5327_v56, 0.0  ;;  %v1916_v58 = vmul.f32 %v5327_v56, %v5327_v56  ;;  %v4005_v59 = vpop.f32.mrb[15].mxu1  ;;  %v1917_v62 = vsel %vm135_vm4, %v1915_v55, 0.0 }
 0x64b   :  { %v1908_v61 = vadd.f32 %v1907_v57, %v1906_v44 }
 0x64c   :  { %v1918_v1 = vsel %vm135_vm4, %v1916_v58, 0.0 }
 0x64d   :  { %v1909_v3 = vrot.slane %v1908_v61, 4  ;;  %v1919_v4 = vadd.f32 %v1918_v1, %v1917_v62 }
 0x64f   :  { %v1910_v45 = vadd.f32 %v1909_v3, %v1908_v61  ;;  %v1920_v7 = vrot.slane %v1919_v4, 4 }
 0x651   :  { %v1911_v5 = vrot.slane %v1910_v45, 2  ;;  %v1921_v10 = vadd.f32 %v1920_v7, %v1919_v4 }
 0x653   :  { %v1912_v6 = vadd.f32 %v1911_v5, %v1910_v45  ;;  %v1922_v12 = vrot.slane %v1921_v10, 2  ;;  %v2139_v45 = vld [vmem:[#allocation3 + $0x4] sm:$0x1]  ;;  %v2142_v5 = vld [vmem:[#allocation3 + $0x8] sm:$0xf] }
 0x655   :  { %v1913_v8 = vrot.slane %v1912_v6, 1  ;;  %v1923_v13 = vadd.f32 %v1922_v12, %v1921_v10 }
 0x657   :  { %v1914_v9 = vadd.f32 %v1913_v8, %v1912_v6  ;;  %v1924_v14 = vrot.slane %v1923_v13, 1  ;;  %v2145_v6 = vld [vmem:[#allocation3 + $0xc] sm:$0x1] }
 0x659   :  { %4023 = vmatmul.mubr.msk.f32.vlgmr.msra.gmra.mrb[14].mxu0 %vm135_vm4, %v1914_v9  ;;  %v1925_v15 = vadd.f32 %v1924_v14, %v1923_v13 }
 0x65a   :  { %4374 = vmatpush3.bf16.msra.mxu0 %v5156_v34  ;;  %4041 = vmatprep.mubr.msk.f32.mxu0 %vm4560_vm0, %v4559_v0 }
 0x65b   :  { %4375 = vmatprep.subr.bf16.mxu0 %v4561_v2 }
 0x65e   :  { %4377 = vmatpush3.bf16.msra.mxu0 %v5166_v27 }
 0x65f   :  { %4378 = vmatprep.subr.bf16.mxu0 %v4561_v2 }
 0x662   :  { %4380 = vmatpush3.bf16.msra.mxu0 %v5176_v37 }
 0x663   :  { %4381 = vmatprep.subr.bf16.mxu0 %v4561_v2 }
 0x666   :  { %4383 = vmatpush3.bf16.msra.mxu0 %v5186_v40 }
 0x667   :  { %4044 = vmatprep.subr.bf16.mxu0 %v4559_v0 }
 0x669   :  { %4042 = vmatmul.mubr.msk.f32.vlgmr.msra.gmra.mrb[16].mxu0 %vm135_vm4, %v1925_v15 }
 0x66a   :  { %4052 = vmatprep.mubr.msk.bf16.mxu0 %vm4560_vm0, %v4559_v0  ;;  %4045 = vmatpush3.bf16.msra.mxu0 %v4523_v16 }
 0x66b   :  { %4046 = vmatprep.subr.bf16.mxu0 %v4559_v0 }
 0x66e   :  { %4047 = vmatpush3.bf16.msra.mxu0 %v4524_v17 }
 0x66f   :  { %4048 = vmatprep.subr.bf16.mxu0 %v4559_v0 }
 0x672   :  { %4049 = vmatpush3.bf16.msra.mxu0 %v4525_v19 }
 0x673   :  { %4050 = vmatprep.subr.bf16.mxu0 %v4559_v0 }
 0x676   :  { %4051 = vmatpush3.bf16.msra.mxu0 %v4526_v22 }
 0x677   :  { %4056 = vmatprep.subr.bf16.mxu0 %v4559_v0 }
 0x72c   :  { %v1997_v24 = vpop.f32.mrb[14].mxu0 }
 0x72d   :  { %v4024_v26 = vpop.f32.mrb[15].mxu0  ;;  %v2001_v29 = vmul.f32 0.0078125, %v1997_v24 }
 0x72f   :  { %v2076_v32 = vmul.f32 %v2001_v29, %v2001_v29 }
 0x73c   :  { %v2071_v30 = vpop.f32.mrb[16].mxu0 }
 0x73d   :  { %v2075_v33 = vmul.f32 0.0078125, %v2071_v30  ;;  %v4043_v36 = vpop.f32.mrb[17].mxu0 }
 0x73f   :  { %v2077_v25 = vsub.f32 %v2075_v33, %v2076_v32 }
 0x741   :  { %v2078_v28 = vadd.f32 1e-05, %v2077_v25 }
 0x743   :  { %4553 = vrsqrt.f32 %v2078_v28 }
 0x74d   :  { %v4554_v38 = vpop.eup %4553 }
 0x74e   :  { %v2080_v39 = vmul.f32 %v4554_v38, %v1926_v35 }
 0x750   :  { %v2081_v43 = vmul.f32 %v2080_v39, %v2001_v29  ;;  %v2087_v46 = vrot.slane %v2080_v39, %v4988_v11 }
 0x752   :  { %v2082_v47 = vsub.f32 %v1927_v42, %v2081_v43  ;;  %v2089_v48 = vmul.f32 %v2087_v46, %v5323_v54  ;;  %v2090_v49 = vmul.f32 %v2087_v46, %v5327_v56  ;;  %v4527_v43 = vld [vmem:[%s5612_s14] sm:$0xff]  }
 0x754   :  { %v2095_v50 = vrot.slane %v2082_v47, %v4988_v11  ;;  %v4528_v47 = vld [vmem:[%s5612_s14 + $0x8] sm:$0xff]  }
 0x756   :  { %v2097_v51 = vadd.f32 %v2095_v50, %v2089_v48  ;;  %v2098_v52 = vadd.f32 %v2095_v50, %v2090_v49  ;;  %v4529_v48 = vld [vmem:[%s5612_s14 + $0x10] sm:$0xff]   ;;  %v4530_v49 = vld [vmem:[%s5612_s14 + $0x18] sm:$0xff]   ;;  %v4532_v50 = vld [vmem:[%s5612_s14 + $0x40] sm:$0xff]  }
 0x758   :  { %v2099_v53 = vadd.f32 %v2097_v51, %v5073_v20  ;;  %v2100_v55 = vadd.f32 %v2098_v52, %v5071_v18  ;;  %v4533_v52 = vld [vmem:[%s5612_s14 + $0x48] sm:$0xff]  }
 0x75a   :  { %v5379_v41 = vmax.f32 %v2099_v53, 0.0  ;;  %v5381_v44 = vmax.f32 %v2100_v55, 0.0 }
 0x75c   :  { %v3395_v57 = vpack.c.bf16 %v5379_v41, %v5379_v41  ;;  %v3396_v54 = vpack.c.bf16 %v5381_v44, %v5381_v44 }
 0x75e   :  { %v2118_v58 = vshrl.u32 %v3395_v57, 16  ;;  %v2126_v56 = vshrl.u32 %v3396_v54, 16  ;;  %v2121_v61 = vshll.u32 %v3395_v57, 16  ;;  %v2129_v1 = vshll.u32 %v3396_v54, 16  ;;  %v4534_v57 = vld [vmem:[%s5612_s14 + $0x50] sm:$0xff]  }
 0x760   :  { %v2120_v59 = vrot.slane %v2118_v58, 7  ;;  %v2128_v62 = vrot.slane %v2126_v56, 7 }
 0x762   :  { %v2123_v3 = vor.u32 %v2121_v61, %v2120_v59  ;;  %v2124_v20 = vrot.slane %v2120_v59, 4  ;;  %v2131_v4 = vor.u32 %v2129_v1, %v2128_v62  ;;  %v2132_v18 = vrot.slane %v2128_v62, 4  ;;  %v4535_v61 = vld [vmem:[%s5612_s14 + $0x58] sm:$0xff]  }
 0x764   :  { %v2137_v7 = vsel %vm5080_vm11, %v2123_v3, %v5261_v63  ;;  %v2140_v8 = vsel %vm5046_vm7, %v2124_v20, %v2139_v45  ;;  %v2143_v9 = vsel %vm5080_vm11, %v2131_v4, %v2142_v5  ;;  %v2146_v10 = vsel %vm5046_vm7, %v2132_v18, %v2145_v6 }
 0x765   :  { %2138 = vst [vmem:[#allocation3] sm:$0xf] %v2137_v7  ;;  %2141 = vst [vmem:[#allocation3 + $0x4] sm:$0x1] %v2140_v8 }
 0x766   :  { %2147 = vst [vmem:[#allocation3 + $0xc] sm:$0x1] %v2146_v10  ;;  %2144 = vst [vmem:[#allocation3 + $0x8] sm:$0xf] %v2143_v9 }
 0x76c   :  { %v5396_v12 = vld [vmem:[#allocation3] sm:$0xf]  ;;  %v2158_v14 = vld [vmem:[#allocation3 + $0x4] sm:$0x1] }
 0x76d   :  { %v2149_v13 = vld [vmem:[#allocation3 + $0x8] sm:$0xf]  ;;  %v2159_v15 = vld [vmem:[#allocation3 + $0xc] sm:$0x1]  ;;  %v2170_v63 = vshrl.u32 %v5396_v12, 16  ;;  %v2173_v16 = vshll.u32 %v5396_v12, 16 }
 0x76e   :  { %v2184_v17 = vshrl.u32 %v2149_v13, 16  ;;  %v2187_v19 = vshll.u32 %v2149_v13, 16  ;;  %v2179_v26 = vshll.u32 %v2158_v14, 16  ;;  %v2193_v32 = vshll.u32 %v2159_v15, 16  ;;  %v2341_v53 = vld [vmem:[#allocation3] sm:$0xe] }
 0x76f   :  { %v2172_v22 = vrot.slane %v2170_v63, 4  ;;  %v2175_v24 = vrot.slane %v2173_v16, 5  ;;  %v3327_v51 = vcombine.low %v5396_v12, %v2149_v13  ;;  %v2342_v55 = vld [vmem:[#allocation3 + $0x8] sm:$0xe]  ;;  %v3341_v54 = vrot.slane %v2341_v53, 9 }
 0x770   :  { %v2186_v29 = vrot.slane %v2184_v17, 4  ;;  %v2189_v30 = vrot.slane %v2187_v19, 5  ;;  %v2181_v28 = vrot.slane %v2179_v26, 5  ;;  %v2195_v38 = vrot.slane %v2193_v32, 5 }
 0x771   :  { %v2176_v33 = vor.u32 %v2175_v24, %v2172_v22  ;;  %v2358_v58 = vrot.slane %v2158_v14, 5  ;;  %v3342_v56 = vrot.slane %v2342_v55, 9  ;;  %v2362_v59 = vrot.slane %v2159_v15, 5  ;;  %v2458_v55 = vld [vmem:[%s5617_s16] sm:$0x1] }
 0x772   :  { %v2190_v36 = vor.u32 %v2189_v30, %v2186_v29 }
 0x773   :  { %v2177_v25 = vrot.slane %v2176_v33, 4  ;;  %v2359_v62 = vsel %vm5134_vm14, %v3341_v54, %v2358_v58  ;;  %v2363_v1 = vsel %vm5134_vm14, %v3342_v56, %v2362_v59 }
 0x774   :  { %v2191_v35 = vrot.slane %v2190_v36, 4  ;;  %v3343_v3 = vcombine.low %v2359_v62, %v2363_v1  ;;  %v4536_v36 = vld [vmem:[%s5615_s17 + $0x20] sm:$0xff]  }
 0x775   :  { %v2182_v39 = vsel %vm4706_vm3, %v2177_v25, %v2181_v28  ;;  %v4537_v25 = vld [vmem:[%s5615_s17 + $0x28] sm:$0xff]   ;;  %v4538_v28 = vld [vmem:[%s5615_s17 + $0x30] sm:$0xff]  }
 0x776   :  { %v2196_v42 = vsel %vm4706_vm3, %v2191_v35, %v2195_v38  ;;  %v4539_v35 = vld [vmem:[%s5615_s17 + $0x38] sm:$0xff]  }
 0x777   :  { %v3321_v46 = vcombine.low %v2182_v39, %v2196_v42 }
 0x779   :  { %4053 = vmatmul.mubr.msk.bf16.vlgmr.msra.gmra.mrb[20].mxu0 %vm135_vm4, %v3321_v46 }
 0x77a   :  { %4057 = vmatpush3.bf16.msra.mxu0 %v4527_v43  ;;  %4064 = vmatprep.mubr.msk.bf16.mxu0 %vm4560_vm0, %v4559_v0 }
 0x77b   :  { %4058 = vmatprep.subr.bf16.mxu0 %v4559_v0 }
 0x77e   :  { %4059 = vmatpush3.bf16.msra.mxu0 %v4528_v47 }
 0x77f   :  { %4060 = vmatprep.subr.bf16.mxu0 %v4559_v0 }
 0x782   :  { %4061 = vmatpush3.bf16.msra.mxu0 %v4529_v48 }
 0x783   :  { %4062 = vmatprep.subr.bf16.mxu0 %v4559_v0 }
 0x786   :  { %4063 = vmatpush3.bf16.msra.mxu0 %v4530_v49 }
 0x787   :  { %4068 = vmatprep.subr.bf16.mxu0 %v4559_v0 }
 0x789   :  { %4065 = vmatmul.mubr.msk.bf16.vlgmr.msra.gmra.mrb[20].mxu0 %vm135_vm4, %v3327_v51  ;;  %v2457_v51 = vld [vmem:[%s5616_s15] sm:$0x1] }
 0x78a   :  { %4069 = vmatpush3.bf16.msra.mxu0 %v4532_v50  ;;  %4076 = vmatprep.mubr.msk.bf16.mxu0 %vm4560_vm0, %v4559_v0 }
 0x78b   :  { %4070 = vmatprep.subr.bf16.mxu0 %v4559_v0 }
 0x78e   :  { %4071 = vmatpush3.bf16.msra.mxu0 %v4533_v52 }
 0x78f   :  { %4072 = vmatprep.subr.bf16.mxu0 %v4559_v0 }
 0x792   :  { %4073 = vmatpush3.bf16.msra.mxu0 %v4534_v57 }
 0x793   :  { %4074 = vmatprep.subr.bf16.mxu0 %v4559_v0 }
 0x796   :  { %4075 = vmatpush3.bf16.msra.mxu0 %v4535_v61 }
 0x797   :  { %4408 = vmatprep.subr.bf16.mxu0 %v4561_v2 }
 0x799   :  { %4077 = vmatmul.mubr.msk.bf16.vlgmr.msra.gmra.mrb[20].mxu0 %vm135_vm4, %v3343_v3 }
 0x79a   :  { %4410 = vmatpush3.bf16.msra.mxu0 %v5156_v34  ;;  %4170 = vmatprep.mubr.msk.f32.mxu0 %vm4560_vm0, %v4559_v0 }
 0x79b   :  { %4411 = vmatprep.subr.bf16.mxu0 %v4561_v2 }
 0x79e   :  { %4413 = vmatpush3.bf16.msra.mxu0 %v5166_v27 }
 0x79f   :  { %4414 = vmatprep.subr.bf16.mxu0 %v4561_v2 }
 0x7a2   :  { %4416 = vmatpush3.bf16.msra.mxu0 %v5176_v37 }
 0x7a3   :  { %4417 = vmatprep.subr.bf16.mxu0 %v4561_v2 }
 0x7a6   :  { %4419 = vmatpush3.bf16.msra.mxu0 %v5186_v40 }
 0x7a7   :  { %4420 = vmatprep.subr.bf16.mxu0 %v4561_v2 }
 0x86c   :  { %v5458_v20 = vpop.f32.mrb[20].mxu0 }
 0x86d   :  { %v2446_v4 = vmul.f32 %v5458_v20, %v5458_v20  ;;  %v4078_v18 = vpop.f32.mrb[21].mxu0  ;;  %v2437_v5 = vsel %vm135_vm4, %v5458_v20, 0.0 }
 0x86e   :  { %v5462_v45 = vpop.f32.mrb[22].mxu0 }
 0x86f   :  { %v2438_v6 = vsel %vm135_vm4, %v5462_v45, 0.0  ;;  %v2447_v7 = vmul.f32 %v5462_v45, %v5462_v45  ;;  %v4079_v8 = vpop.f32.mrb[23].mxu0  ;;  %v2448_v10 = vsel %vm135_vm4, %v2446_v4, 0.0 }
 0x870   :  { %v2439_v9 = vadd.f32 %v2438_v6, %v2437_v5 }
 0x871   :  { %v2449_v13 = vsel %vm135_vm4, %v2447_v7, 0.0 }
 0x872   :  { %v2440_v14 = vrot.slane %v2439_v9, 4  ;;  %v2450_v15 = vadd.f32 %v2449_v13, %v2448_v10 }
 0x874   :  { %v2441_v63 = vadd.f32 %v2440_v14, %v2439_v9  ;;  %v2451_v19 = vrot.slane %v2450_v15, 4 }
 0x876   :  { %v2442_v16 = vrot.slane %v2441_v63, 2  ;;  %v2452_v26 = vadd.f32 %v2451_v19, %v2450_v15 }
 0x878   :  { %v2443_v17 = vadd.f32 %v2442_v16, %v2441_v63  ;;  %v2453_v29 = vrot.slane %v2452_v26, 2  ;;  %v2660_v16 = vld [vmem:[#allocation3 + $0x4] sm:$0x1] }
 0x87a   :  { %v2444_v22 = vrot.slane %v2443_v17, 1  ;;  %v2454_v30 = vadd.f32 %v2453_v29, %v2452_v26 }
 0x87c   :  { %v2445_v24 = vadd.f32 %v2444_v22, %v2443_v17  ;;  %v2455_v32 = vrot.slane %v2454_v30, 1  ;;  %v2666_v17 = vld [vmem:[#allocation3 + $0xc] sm:$0x1] }
 0x87e   :  { %4097 = vmatmul.mubr.msk.f32.vlgmr.msra.gmra.mrb[16].mxu1 %vm135_vm4, %v2445_v24  ;;  %v2456_v33 = vadd.f32 %v2455_v32, %v2454_v30 }
 0x87f   :  { %4398 = vmatpush3.bf16.msra.mxu1 %v5156_v34  ;;  %4115 = vmatprep.mubr.msk.f32.mxu1 %vm4560_vm0, %v4559_v0 }
 0x880   :  { %4399 = vmatprep.subr.bf16.mxu1 %v4561_v2 }
 0x883   :  { %4401 = vmatpush3.bf16.msra.mxu1 %v5166_v27 }
 0x884   :  { %4402 = vmatprep.subr.bf16.mxu1 %v4561_v2 }
 0x887   :  { %4404 = vmatpush3.bf16.msra.mxu1 %v5176_v37 }
 0x888   :  { %4405 = vmatprep.subr.bf16.mxu1 %v4561_v2 }
 0x88b   :  { %4407 = vmatpush3.bf16.msra.mxu1 %v5186_v40 }
 0x88c   :  { %4118 = vmatprep.subr.bf16.mxu1 %v4559_v0 }
 0x88e   :  { %4116 = vmatmul.mubr.msk.f32.vlgmr.msra.gmra.mrb[18].mxu1 %vm135_vm4, %v2456_v33 }
 0x88f   :  { %4126 = vmatprep.mubr.msk.bf16.mxu1 %vm4560_vm0, %v4559_v0  ;;  %4119 = vmatpush3.bf16.msra.mxu1 %v4536_v36 }
 0x890   :  { %4120 = vmatprep.subr.bf16.mxu1 %v4559_v0 }
 0x893   :  { %4121 = vmatpush3.bf16.msra.mxu1 %v4537_v25 }
 0x894   :  { %4122 = vmatprep.subr.bf16.mxu1 %v4559_v0 }
 0x897   :  { %4123 = vmatpush3.bf16.msra.mxu1 %v4538_v28 }
 0x898   :  { %4124 = vmatprep.subr.bf16.mxu1 %v4559_v0 }
 0x89b   :  { %4125 = vmatpush3.bf16.msra.mxu1 %v4539_v35 }
 0x89c   :  { %4130 = vmatprep.subr.bf16.mxu1 %v4559_v0 }
 0x951   :  { %v2528_v38 = vpop.f32.mrb[16].mxu1 }
 0x952   :  { %v4098_v39 = vpop.f32.mrb[17].mxu1  ;;  %v2532_v42 = vmul.f32 0.0078125, %v2528_v38 }
 0x954   :  { %v2607_v46 = vmul.f32 %v2532_v42, %v2532_v42 }
 0x961   :  { %v2602_v43 = vpop.f32.mrb[18].mxu1 }
 0x962   :  { %v2606_v47 = vmul.f32 0.0078125, %v2602_v43  ;;  %v4117_v48 = vpop.f32.mrb[19].mxu1 }
 0x964   :  { %v2608_v49 = vsub.f32 %v2606_v47, %v2607_v46 }
 0x966   :  { %v2609_v50 = vadd.f32 1e-05, %v2608_v49 }
 0x968   :  { %4555 = vrsqrt.f32 %v2609_v50 }
 0x972   :  { %v4556_v52 = vpop.eup %4555 }
 0x973   :  { %v2611_v53 = vmul.f32 %v4556_v52, %v2457_v51 }
 0x975   :  { %v2612_v57 = vmul.f32 %v2611_v53, %v2532_v42  ;;  %v2618_v54 = vrot.slane %v2611_v53, %v4988_v11  ;;  %v4540_v53 = vld [vmem:[%s5615_s17] sm:$0xff]  }
 0x977   :  { %v2613_v58 = vsub.f32 %v2458_v55, %v2612_v57  ;;  %v2620_v56 = vmul.f32 %v2618_v54, %v5458_v20  ;;  %v2621_v59 = vmul.f32 %v2618_v54, %v5462_v45  ;;  %v2663_v45 = vld [vmem:[#allocation3 + $0x8] sm:$0xf]  ;;  %v4543_v54 = vld [vmem:[%s5615_s17 + $0x18] sm:$0xff]  }
 0x978   :  { %v4541_v57 = vld [vmem:[%s5615_s17 + $0x8] sm:$0xff]  }
 0x979   :  { %v2626_v61 = vrot.slane %v2613_v58, %v4988_v11  ;;  %v4545_v58 = vld [vmem:[%s5615_s17 + $0x40] sm:$0xff]  }
 0x97b   :  { %v2628_v62 = vadd.f32 %v2626_v61, %v2620_v56  ;;  %v2629_v1 = vadd.f32 %v2626_v61, %v2621_v59  ;;  %v4546_v59 = vld [vmem:[%s5615_s17 + $0x48] sm:$0xff]  }
 0x97d   :  { %v2630_v3 = vmax.f32 %v2628_v62, 0.0  ;;  %v2631_v4 = vmax.f32 %v2629_v1, 0.0  ;;  %v4547_v1 = vld [vmem:[%s5615_s17 + $0x50] sm:$0xff]  }
 0x97f   :  { %v3397_v18 = vpack.c.bf16 %v2630_v3, %v2630_v3  ;;  %v3398_v5 = vpack.c.bf16 %v2631_v4, %v2631_v4 }
 0x981   :  { %v2639_v6 = vshrl.u32 %v3397_v18, 16  ;;  %v2647_v7 = vshrl.u32 %v3398_v5, 16  ;;  %v2642_v9 = vshll.u32 %v3397_v18, 16  ;;  %v2650_v13 = vshll.u32 %v3398_v5, 16 }
 0x983   :  { %v2641_v8 = vrot.slane %v2639_v6, 7  ;;  %v2649_v10 = vrot.slane %v2647_v7, 7  ;;  %v4548_v6 = vld [vmem:[%s5615_s17 + $0x58] sm:$0xff]  }
 0x985   :  { %v2644_v14 = vor.u32 %v2642_v9, %v2641_v8  ;;  %v2645_v15 = vrot.slane %v2641_v8, 4  ;;  %v2652_v63 = vor.u32 %v2650_v13, %v2649_v10  ;;  %v2653_v20 = vrot.slane %v2649_v10, 4 }
 0x987   :  { %v2658_v19 = vsel %vm5080_vm11, %v2644_v14, %v5396_v12  ;;  %v2661_v22 = vsel %vm5046_vm7, %v2645_v15, %v2660_v16  ;;  %v2664_v24 = vsel %vm5080_vm11, %v2652_v63, %v2663_v45  ;;  %v2667_v26 = vsel %vm5046_vm7, %v2653_v20, %v2666_v17 }
 0x988   :  { %2659 = vst [vmem:[#allocation3] sm:$0xf] %v2658_v19  ;;  %2662 = vst [vmem:[#allocation3 + $0x4] sm:$0x1] %v2661_v22 }
 0x989   :  { %2665 = vst [vmem:[#allocation3 + $0x8] sm:$0xf] %v2664_v24  ;;  %2668 = vst [vmem:[#allocation3 + $0xc] sm:$0x1] %v2667_v26 }
 0x98f   :  { %v2669_v29 = vld [vmem:[#allocation3] sm:$0xf]  ;;  %v2679_v32 = vld [vmem:[#allocation3 + $0x4] sm:$0x1] }
 0x990   :  { %v2670_v30 = vld [vmem:[#allocation3 + $0x8] sm:$0xf]  ;;  %v2680_v33 = vld [vmem:[#allocation3 + $0xc] sm:$0x1]  ;;  %v2691_v36 = vshrl.u32 %v2669_v29, 16  ;;  %v2694_v25 = vshll.u32 %v2669_v29, 16 }
 0x991   :  { %v2705_v12 = vshrl.u32 %v2670_v30, 16  ;;  %v2708_v28 = vshll.u32 %v2670_v30, 16  ;;  %v2700_v39 = vshll.u32 %v2679_v32, 16  ;;  %v2714_v43 = vshll.u32 %v2680_v33, 16  ;;  %v2862_v61 = vld [vmem:[#allocation3] sm:$0xe] }
 0x992   :  { %v2693_v35 = vrot.slane %v2691_v36, 4  ;;  %v2696_v38 = vrot.slane %v2694_v25, 5  ;;  %v3367_v56 = vcombine.low %v2669_v29, %v2670_v30  ;;  %v2863_v62 = vld [vmem:[#allocation3 + $0x8] sm:$0xe]  ;;  %v3381_v3 = vrot.slane %v2862_v61, 9 }
 0x993   :  { %v2707_v31 = vrot.slane %v2705_v12, 4  ;;  %v2710_v42 = vrot.slane %v2708_v28, 5  ;;  %v2702_v48 = vrot.slane %v2700_v39, 5  ;;  %v2716_v50 = vrot.slane %v2714_v43, 5 }
 0x994   :  { %v2697_v60 = vor.u32 %v2696_v38, %v2693_v35  ;;  %v2879_v4 = vrot.slane %v2679_v32, 5  ;;  %v3382_v18 = vrot.slane %v2863_v62, 9  ;;  %v2883_v5 = vrot.slane %v2680_v33, 5 }
 0x995   :  { %v2711_v46 = vor.u32 %v2710_v42, %v2707_v31 }
 0x996   :  { %v2698_v47 = vrot.slane %v2697_v60, 4  ;;  %v2880_v7 = vsel %vm5134_vm14, %v3381_v3, %v2879_v4  ;;  %v2884_v8 = vsel %vm5134_vm14, %v3382_v18, %v2883_v5 }
 0x997   :  { %v2712_v49 = vrot.slane %v2711_v46, 4  ;;  %v3383_v9 = vcombine.low %v2880_v7, %v2884_v8 }
 0x998   :  { %v2703_v51 = vsel %vm4706_vm3, %v2698_v47, %v2702_v48 }
 0x999   :  { %v2717_v52 = vsel %vm4706_vm3, %v2712_v49, %v2716_v50 }
 0x99a   :  { %v3361_v55 = vcombine.low %v2703_v51, %v2717_v52 }
 0x99c   :  { %4127 = vmatmul.mubr.msk.bf16.vlgmr.msra.gmra.mrb[20].mxu1 %vm135_vm4, %v3361_v55 }
 0x99d   :  { %4131 = vmatpush3.bf16.msra.mxu1 %v4540_v53  ;;  %4138 = vmatprep.mubr.msk.bf16.mxu1 %vm4560_vm0, %v4559_v0 }
 0x99e   :  { %4132 = vmatprep.subr.bf16.mxu1 %v4559_v0 }
 0x9a1   :  { %4133 = vmatpush3.bf16.msra.mxu1 %v4541_v57 }
 0x9a2   :  { %4134 = vmatprep.subr.bf16.mxu1 %v4559_v0 }
 0x9a5   :  { %4135 = vmatpush3.bf16.msra.mxu1 %v4542_v21 }
 0x9a6   :  { %4136 = vmatprep.subr.bf16.mxu1 %v4559_v0 }
 0x9a9   :  { %4137 = vmatpush3.bf16.msra.mxu1 %v4543_v54 }
 0x9aa   :  { %4142 = vmatprep.subr.bf16.mxu1 %v4559_v0 }
 0x9ac   :  { %4139 = vmatmul.mubr.msk.bf16.vlgmr.msra.gmra.mrb[20].mxu1 %vm135_vm4, %v3367_v56 }
 0x9ad   :  { %4143 = vmatpush3.bf16.msra.mxu1 %v4545_v58  ;;  %4150 = vmatprep.mubr.msk.bf16.mxu1 %vm4560_vm0, %v4559_v0 }
 0x9ae   :  { %4144 = vmatprep.subr.bf16.mxu1 %v4559_v0 }
 0x9b1   :  { %4145 = vmatpush3.bf16.msra.mxu1 %v4546_v59 }
 0x9b2   :  { %4146 = vmatprep.subr.bf16.mxu1 %v4559_v0 }
 0x9b5   :  { %4147 = vmatpush3.bf16.msra.mxu1 %v4547_v1 }
 0x9b6   :  { %4148 = vmatprep.subr.bf16.mxu1 %v4559_v0 }
 0x9b9   :  { %4149 = vmatpush3.bf16.msra.mxu1 %v4548_v6 }
 0x9bc   :  { %4151 = vmatmul.mubr.msk.bf16.vlgmr.msra.gmra.mrb[20].mxu1 %vm135_vm4, %v3383_v9 }
 0xa8f   :  { %v2949_v10 = vpop.f32.mrb[20].mxu1 }
 0xa90   :  { %v2967_v13 = vmul.f32 %v2949_v10, %v2949_v10  ;;  %v4152_v14 = vpop.f32.mrb[21].mxu1  ;;  %v2958_v63 = vsel %vm135_vm4, %v2949_v10, 0.0 }
 0xa91   :  { %v2952_v15 = vpop.f32.mrb[22].mxu1 }
 0xa92   :  { %v2959_v20 = vsel %vm135_vm4, %v2952_v15, 0.0  ;;  %v2968_v16 = vmul.f32 %v2952_v15, %v2952_v15  ;;  %v4153_v45 = vpop.f32.mrb[23].mxu1  ;;  %v2969_v19 = vsel %vm135_vm4, %v2967_v13, 0.0 }
 0xa93   :  { %v2960_v17 = vadd.f32 %v2959_v20, %v2958_v63 }
 0xa94   :  { %v2970_v23 = vsel %vm135_vm4, %v2968_v16, 0.0 }
 0xa95   :  { %v2961_v22 = vrot.slane %v2960_v17, 4  ;;  %v2971_v24 = vadd.f32 %v2970_v23, %v2969_v19 }
 0xa97   :  { %v2962_v26 = vadd.f32 %v2961_v22, %v2960_v17  ;;  %v2972_v32 = vrot.slane %v2971_v24, 4 }
 0xa99   :  { %v2963_v29 = vrot.slane %v2962_v26, 2  ;;  %v2973_v25 = vadd.f32 %v2972_v32, %v2971_v24 }
 0xa9b   :  { %v2964_v30 = vadd.f32 %v2963_v29, %v2962_v26  ;;  %v2974_v12 = vrot.slane %v2973_v25, 2 }
 0xa9d   :  { %v2965_v33 = vrot.slane %v2964_v30, 1  ;;  %v2975_v28 = vadd.f32 %v2974_v12, %v2973_v25 }
 0xa9f   :  { %v2966_v36 = vadd.f32 %v2965_v33, %v2964_v30  ;;  %v2976_v35 = vrot.slane %v2975_v28, 1 }
 0xaa1   :  { %4171 = vmatmul.mubr.msk.f32.vlgmr.msra.gmra.mrb[18].mxu0 %vm135_vm4, %v2966_v36  ;;  %v2977_v38 = vadd.f32 %v2976_v35, %v2975_v28 }
 0xaa2   :  { %4422 = vmatpush3.bf16.msra.mxu0 %v5156_v34  ;;  %4189 = vmatprep.mubr.msk.f32.mxu0 %vm4560_vm0, %v4559_v0 }
 0xaa3   :  { %4423 = vmatprep.subr.bf16.mxu0 %v4561_v2 }
 0xaa6   :  { %4425 = vmatpush3.bf16.msra.mxu0 %v5166_v27 }
 0xaa7   :  { %4426 = vmatprep.subr.bf16.mxu0 %v4561_v2 }
 0xaaa   :  { %4428 = vmatpush3.bf16.msra.mxu0 %v5176_v37  ;;  %v2978_v37 = vld [vmem:[%s5618_s18] sm:$0x1] }
 0xaab   :  { %4429 = vmatprep.subr.bf16.mxu0 %v4561_v2 }
 0xaae   :  { %4431 = vmatpush3.bf16.msra.mxu0 %v5186_v40  ;;  %v2979_v40 = vld [vmem:[%s5619_s19] sm:$0x1] }
 0xab1   :  { %4190 = vmatmul.mubr.msk.f32.vlgmr.msra.gmra.mrb[24].mxu0 %vm135_vm4, %v2977_v38 }
 0xb74   :  { %v3049_v34 = vpop.f32.mrb[18].mxu0 }
 0xb75   :  { %v4172_v0 = vpop.f32.mrb[19].mxu0  ;;  %v3053_v39 = vmul.f32 0.0078125, %v3049_v34 }
 0xb77   :  { %v3128_v42 = vmul.f32 %v3053_v39, %v3053_v39 }
 0xb84   :  { %v3123_v31 = vpop.f32.mrb[24].mxu0 }
 0xb85   :  { %v3127_v43 = vmul.f32 0.0078125, %v3123_v31  ;;  %v4191_v27 = vpop.f32.mrb[25].mxu0 }
 0xb87   :  { %v3129_v60 = vsub.f32 %v3127_v43, %v3128_v42 }
 0xb89   :  { %v3130_v46 = vadd.f32 1e-05, %v3129_v60 }
 0xb8b   :  { %4557 = vrsqrt.f32 %v3130_v46 }
 0xb95   :  { %v4558_v2 = vpop.eup %4557 }
 0xb96   :  { %v3132_v47 = vmul.f32 %v4558_v2, %v2978_v37 }
 0xb98   :  { %v3133_v48 = vmul.f32 %v3132_v47, %v3053_v39  ;;  %v3139_v49 = vrot.slane %v3132_v47, %v4988_v11 }
 0xb9a   :  { %v3134_v50 = vsub.f32 %v2979_v40, %v3133_v48  ;;  %v3141_v51 = vmul.f32 %v3139_v49, %v2949_v10  ;;  %v3142_v52 = vmul.f32 %v3139_v49, %v2952_v15 }
 0xb9c   :  { %v3147_v53 = vrot.slane %v3134_v50, %v4988_v11 }
 0xb9e   :  { %v3149_v55 = vadd.f32 %v3147_v53, %v3141_v51  ;;  %v3150_v57 = vadd.f32 %v3147_v53, %v3142_v52 }
 0xba0   :  { %v3151_v21 = vadd.f32 %v3149_v55, %v5379_v41  ;;  %v3152_v54 = vadd.f32 %v3150_v57, %v5381_v44 }
 0xba2   :  { %v3153_v58 = vmax.f32 %v3151_v21, 0.0  ;;  %v3154_v56 = vmax.f32 %v3152_v54, 0.0 }
 0xba4   :  { %3155 = vst.msk [vmem:[%s5620_s20] sm:$0xff] %vm135_vm4, %v3153_v58  ;;  %3156 = vst.msk [vmem:[%s5620_s20 + $0x8] sm:$0xff] %vm135_vm4, %v3154_v56 }

</bundles_post_ra>
